<compile_context>
chip_gen: v7x
topology: tpu7x:2x2x1
jax: 0.10.0
libtpu: 0.0.40
codegen_flags: <defaults>
</compile_context>

<pallas_src>
import jax
import jax.numpy as jnp
from jax.experimental import pallas as pl
from jax.experimental.pallas import tpu as pltpu


# ------------------------- one-time weight packing -------------------------

def pack_upsample_params(params, up_shape, skip_shape):
    """Pack module weights into MXU/lane-friendly matrices (call once, outside jit).

    Packed-row convention: "packed row m" of an image holds image row 2m in lanes
    [0, W*C) and image row 2m+1 in lanes [W*C, 2*W*C), with lane = x*C + c.
    """
    f32 = jnp.float32
    _, Hu, Wu, Cin = up_shape          # Cin  = module in_channels
    _, H, W, Cu = skip_shape           # Cu   = in_channels // 2 (skip / upConv-out chans)
    Cout = params["c1_w"].shape[3]

    # --- ConvTranspose2d(k=2, s=2) as one matmul that directly emits packed rows.
    # column = k*(W*Cu) + (2*w + l)*Cu + d  ->  row m of (up_row_m @ wup) already holds
    # upsampled rows 2m (lanes [0,W*Cu)) and 2m+1 (lanes [W*Cu,2*W*Cu)).
    up_w = params["up_w"].astype(f32)                                   # (2, 2, Cin, Cu)
    wup = jnp.einsum("wx,klcd->wckxld", jnp.eye(Wu, dtype=f32), up_w)
    wup = wup.reshape(Wu * Cin, 2 * W * Cu)
    bup = jnp.tile(params["up_b"].astype(f32), 2 * W)[None, :]          # (1, 2*W*Cu)

    # --- Banded (block-Toeplitz) matrix for one dy-tap of a 3x3 conv, with the
    #     x-padding folded in:  M[xi*cin+ci, xo*cout+co] = w[xi-xo+1, ci, co]
    #     for 0 <= xi-xo+1 <= 2, else 0.  (No padded lane columns needed.)
    def band(w_dy):                                     # w_dy: (3, cin, cout)
        cin, cout = w_dy.shape[1], w_dy.shape[2]
        m = jnp.zeros((W, cin, W, cout), f32)
        for dx in range(3):
            shift = jnp.eye(W, W, k=1 - dx, dtype=f32)  # [xi,xo]=1 iff xi = xo + dx - 1
            m = m + jnp.einsum("pq,cd->pcqd", shift, w_dy[dx].astype(f32))
        return m.reshape(W * cin, W * cout)

    # conv1 operates on the merged packed slab:
    #   lanes [0,WCu)=up row 2m, [WCu,2WCu)=up row 2m+1, [2WCu,3WCu)=skip row 2m,
    #   [3WCu,4WCu)=skip row 2m+1.
    # Even output rows:  out[2m]   = Ppad[m]   @ A0 + Ppad[m+1] @ A1
    # Odd  output rows:  out[2m+1] = Ppad[m+1] @ B0 + Ppad[m+2] @ B1
    c1 = params["c1_w"].astype(f32)                     # (3, 3, 2*Cu, Cout), HWIO
    Bu = [band(c1[dy, :, :Cu, :]) for dy in range(3)]   # up-channel taps
    Bs = [band(c1[dy, :, Cu:, :]) for dy in range(3)]   # skip-channel taps
    Z1 = jnp.zeros((W * Cu, W * Cout), f32)
    m1 = jnp.stack([
        jnp.concatenate([Z1,    Bu[0], Z1,    Bs[0]], axis=0),   # A0
        jnp.concatenate([Bu[1], Bu[2], Bs[1], Bs[2]], axis=0),   # A1
        jnp.concatenate([Bu[0], Bu[1], Bs[0], Bs[1]], axis=0),   # B0
        jnp.concatenate([Bu[2], Z1,    Bs[2], Z1],    axis=0),   # B1
    ])                                                            # (4, 4*W*Cu, W*Cout)

    c2 = params["c2_w"].astype(f32)                     # (3, 3, Cout, Cout)
    Bh = [band(c2[dy]) for dy in range(3)]
    Z2 = jnp.zeros((W * Cout, W * Cout), f32)
    m2 = jnp.stack([
        jnp.concatenate([Z2,    Bh[0]], axis=0),
        jnp.concatenate([Bh[1], Bh[2]], axis=0),
        jnp.concatenate([Bh[0], Bh[1]], axis=0),
        jnp.concatenate([Bh[2], Z2],    axis=0),
    ])                                                            # (4, 2*W*Cout, W*Cout)

    b1 = jnp.tile(params["c1_b"].astype(f32), W)[None, :]         # (1, W*Cout)
    b2 = jnp.tile(params["c2_b"].astype(f32), W)[None, :]
    tmw = jnp.tile(params["tm_w"].astype(f32), (1, W))            # (T, W*Cout)
    tmb = jnp.tile(params["tm_b"].astype(f32), W)[None, :]

    return dict(wup=wup, bup=bup, m1=m1, b1=b1, m2=m2, b2=b2, tmw=tmw, tmb=tmb)


def _pick_batch_block(n, target=8):
    nb = min(n, target)
    while n % nb:
        nb -= 1
    return nb


# ------------------------- fused forward -------------------------

def upsample_forward_packed(packed, up, skip, t_emb, batch_block=None):
    """UpSample.forward, fully fused.
    up: (N,Hu,Wu,Cin) NHWC, skip: (N,H,W,Cu) NHWC (H=2Hu, W=2Wu), t_emb: (N,T).
    Returns (N, H, W, Cout) NHWC."""
    N, Hu, Wu, Cin = up.shape
    _, H, W, Cu = skip.shape
    T = t_emb.shape[1]
    Cout = packed["b1"].shape[1] // W
    dtype = up.dtype
    WCu, WCo = W * Cu, W * Cout
    assert H == 2 * Hu and W == 2 * Wu

    Nb = batch_block or _pick_batch_block(N)     # images per grid step
    assert N % Nb == 0

    # Metadata-only reshapes (row-major): packed-row layout for skip, flat lanes for up.
    up2 = up.reshape(N, Hu, Wu * Cin)            # lane = w*Cin + c
    skip2 = skip.reshape(N, Hu, 2 * WCu)         # packed rows: [0,WCu)=row 2m, [WCu,)=2m+1
    temb = t_emb.reshape(N, 1, T)

    def kernel(up_ref, skip_ref, temb_ref, wup_ref, bup_ref,
               m1_ref, b1_ref, tmw_ref, tmb_ref, m2_ref, b2_ref,
               o_ref, xpad_ref, hpad_ref):
        f32 = jnp.float32

        # y-padding borders only (x-padding is folded into the band weights).
        # Per-step (not pid==0-gated) so it is correct when the grid is split
        # across TensorCores (v7x); 4 single-row stores, negligible.
        xpad_ref[:, 0:1, :] = jnp.zeros((Nb, 1, 4 * WCu), f32)
        xpad_ref[:, Hu + 1:Hu + 2, :] = jnp.zeros((Nb, 1, 4 * WCu), f32)
        hpad_ref[:, 0:1, :] = jnp.zeros((Nb, 1, 2 * WCo), f32)
        hpad_ref[:, Hu + 1:Hu + 2, :] = jnp.zeros((Nb, 1, 2 * WCo), f32)

        # --- ConvTranspose2d(k=2, s=2): one matmul whose row m *is* packed row m
        #     (rows 2m | 2m+1 in lanes).  No interleave, two dense 128-lane stores.
        up_flat = up_ref[...].reshape(Nb * Hu, Wu * Cin).astype(f32)
        taps = jnp.dot(up_flat, wup_ref[...], preferred_element_type=f32) + bup_ref[...]
        xpad_ref[:, 1:Hu + 1, 0:2 * WCu] = taps.reshape(Nb, Hu, 2 * WCu)
        xpad_ref[:, 1:Hu + 1, 2 * WCu:4 * WCu] = skip_ref[...].astype(f32)

        # --- conv1 (3x3, pad=1) on packed rows: 4 banded matmuls (even/odd out rows).
        x_a = xpad_ref[:, 0:Hu, :].reshape(Nb * Hu, 4 * WCu)
        x_b = xpad_ref[:, 1:Hu + 1, :].reshape(Nb * Hu, 4 * WCu)
        x_c = xpad_ref[:, 2:Hu + 2, :].reshape(Nb * Hu, 4 * WCu)
        acc_e = (jnp.dot(x_a, m1_ref[0], preferred_element_type=f32) +
                 jnp.dot(x_b, m1_ref[1], preferred_element_type=f32))
        acc_o = (jnp.dot(x_b, m1_ref[2], preferred_element_type=f32) +
                 jnp.dot(x_c, m1_ref[3], preferred_element_type=f32))

        # time-embedding projection (added AFTER the first ReLU, as in the module).
        t_add = (jnp.dot(temb_ref[...].reshape(Nb, T).astype(f32), tmw_ref[...],
                         preferred_element_type=f32) + tmb_ref[...])   # (Nb, WCo)
        t_add = t_add.reshape(Nb, 1, WCo)
        b1 = b1_ref[...]
        h_e = jnp.maximum(acc_e.reshape(Nb, Hu, WCo) + b1, 0.0) + t_add
        h_o = jnp.maximum(acc_o.reshape(Nb, Hu, WCo) + b1, 0.0) + t_add
        hpad_ref[:, 1:Hu + 1, :] = jnp.concatenate([h_e, h_o], axis=-1)  # dense 128 lanes

        # --- conv2 (3x3, pad=1), same packed structure.
        h_a = hpad_ref[:, 0:Hu, :].reshape(Nb * Hu, 2 * WCo)
        h_b = hpad_ref[:, 1:Hu + 1, :].reshape(Nb * Hu, 2 * WCo)
        h_c = hpad_ref[:, 2:Hu + 2, :].reshape(Nb * Hu, 2 * WCo)
        o_e = (jnp.dot(h_a, m2_ref[0], preferred_element_type=f32) +
               jnp.dot(h_b, m2_ref[1], preferred_element_type=f32))
        o_o = (jnp.dot(h_b, m2_ref[2], preferred_element_type=f32) +
               jnp.dot(h_c, m2_ref[3], preferred_element_type=f32))
        b2 = b2_ref[...]
        out_e = jnp.maximum(o_e.reshape(Nb, Hu, WCo) + b2, 0.0)
        out_o = jnp.maximum(o_o.reshape(Nb, Hu, WCo) + b2, 0.0)
        # 128-lane dense writeback in packed-row layout (free reshape in wrapper).
        o_ref[...] = jnp.concatenate([out_e, out_o], axis=-1).astype(o_ref.dtype)

    out_flat = pl.pallas_call(
        kernel,
        out_shape=jax.ShapeDtypeStruct((N, Hu, 2 * WCo), dtype),
        grid=(N // Nb,),
        in_specs=[
            pl.BlockSpec((Nb, Hu, Wu * Cin), lambda n: (n, 0, 0)),
            pl.BlockSpec((Nb, Hu, 2 * WCu), lambda n: (n, 0, 0)),
            pl.BlockSpec((Nb, 1, T), lambda n: (n, 0, 0)),
            pl.BlockSpec((Wu * Cin, 2 * WCu), lambda n: (0, 0)),
            pl.BlockSpec((1, 2 * WCu), lambda n: (0, 0)),
            pl.BlockSpec((4, 4 * WCu, WCo), lambda n: (0, 0, 0)),
            pl.BlockSpec((1, WCo), lambda n: (0, 0)),
            pl.BlockSpec((T, WCo), lambda n: (0, 0)),
            pl.BlockSpec((1, WCo), lambda n: (0, 0)),
            pl.BlockSpec((4, 2 * WCo, WCo), lambda n: (0, 0, 0)),
            pl.BlockSpec((1, WCo), lambda n: (0, 0)),
        ],
        out_specs=pl.BlockSpec((Nb, Hu, 2 * WCo), lambda n: (n, 0, 0)),
        scratch_shapes=[
            pltpu.VMEM((Nb, Hu + 2, 4 * WCu), jnp.float32),   # packed up||skip, y-padded
            pltpu.VMEM((Nb, Hu + 2, 2 * WCo), jnp.float32),   # packed hidden,   y-padded
        ],
        compiler_params=pltpu.CompilerParams(dimension_semantics=("parallel",)),
    )(up2, skip2, temb,
      packed["wup"], packed["bup"], packed["m1"], packed["b1"],
      packed["tmw"], packed["tmb"], packed["m2"], packed["b2"])

    # (N, Hu, 2*W*Cout) has the identical HBM layout as (N, H, W, Cout): free reshape.
    return out_flat.reshape(N, H, W, Cout)


def upsample_forward(params, up, skip, t_emb):
    packed = pack_upsample_params(params, up.shape, skip.shape)
    return upsample_forward_packed(packed, up, skip, t_emb)


# ------------------------- pure-JAX reference -------------------------

def _ref_forward(params, up, skip, t_emb):
    N, Hu, Wu, Cin = up.shape
    Cu = params["up_w"].shape[3]
    u = jnp.einsum("nhwc,klcd->nhkwld", up, params["up_w"])
    u = u.reshape(N, 2 * Hu, 2 * Wu, Cu) + params["up_b"]
    x = jnp.concatenate([u, skip], axis=-1)

    def conv(x_, w_, b_):
        y = jax.lax.conv_general_dilated(
            x_, w_, window_strides=(1, 1), padding=((1, 1), (1, 1)),
            dimension_numbers=("NHWC", "HWIO", "NHWC"))
        return y + b_

    h = jnp.maximum(conv(x, params["c1_w"], params["c1_b"]), 0.0)
    t_proj = t_emb @ params["tm_w"] + params["tm_b"]
    h = h + t_proj[:, None, None, :]
    return jnp.maximum(conv(h, params["c2_w"], params["c2_b"]), 0.0)


# ------------------------- main -------------------------

if __name__ == "__main__":
    N = 2
    in_channels = 8
    out_channels = 4
    time_emb_dim = 16
    Hu, Wu = 8, 8                     # spatial size of the "upConv" input
    Cu = in_channels // 2             # ConvTranspose output channels == skip channels

    key = jax.random.PRNGKey(0)
    ks = jax.random.split(key, 11)
    params = {
        "up_w": 0.1 * jax.random.normal(ks[0], (2, 2, in_channels, Cu), jnp.float32),
        "up_b": 0.1 * jax.random.normal(ks[1], (Cu,), jnp.float32),
        "c1_w": 0.1 * jax.random.normal(ks[2], (3, 3, in_channels, out_channels), jnp.float32),
        "c1_b": 0.1 * jax.random.normal(ks[3], (out_channels,), jnp.float32),
        "c2_w": 0.1 * jax.random.normal(ks[4], (3, 3, out_channels, out_channels), jnp.float32),
        "c2_b": 0.1 * jax.random.normal(ks[5], (out_channels,), jnp.float32),
        "tm_w": 0.1 * jax.random.normal(ks[6], (time_emb_dim, out_channels), jnp.float32),
        "tm_b": 0.1 * jax.random.normal(ks[7], (out_channels,), jnp.float32),
    }

    up = jax.random.normal(ks[8], (N, Hu, Wu, in_channels), jnp.float32)
    skip = jax.random.normal(ks[9], (N, 2 * Hu, 2 * Wu, Cu), jnp.float32)
    t_emb = jax.random.normal(ks[10], (N, time_emb_dim), jnp.float32)

    packed = pack_upsample_params(params, up.shape, skip.shape)  # one-time weight packing
    fwd = jax.jit(upsample_forward_packed)
    out = jax.block_until_ready(fwd(packed, up, skip, t_emb))

    ref = _ref_forward(params, up, skip, t_emb)
    assert out.shape == (N, 2 * Hu, 2 * Wu, out_channels), out.shape
    assert jnp.allclose(out, ref, rtol=1e-4, atol=1e-4), float(jnp.max(jnp.abs(out - ref)))

    print("KERNEL_OK")
</pallas_src>

<mosaic_0001>
module attributes {stable_mosaic.version = 11 : i64} {
  func.func @kernel(%arg0: i32, %arg1: memref<2x8x64xf32, #tpu.memory_space<vmem>>, %arg2: memref<2x8x128xf32, #tpu.memory_space<vmem>>, %arg3: memref<2x1x16xf32, #tpu.memory_space<vmem>>, %arg4: memref<64x128xf32, #tpu.memory_space<vmem>>, %arg5: memref<1x128xf32, #tpu.memory_space<vmem>>, %arg6: memref<4x256x64xf32, #tpu.memory_space<vmem>>, %arg7: memref<1x64xf32, #tpu.memory_space<vmem>>, %arg8: memref<16x64xf32, #tpu.memory_space<vmem>>, %arg9: memref<1x64xf32, #tpu.memory_space<vmem>>, %arg10: memref<4x128x64xf32, #tpu.memory_space<vmem>>, %arg11: memref<1x64xf32, #tpu.memory_space<vmem>>, %arg12: memref<2x8x128xf32, #tpu.memory_space<vmem>>, %arg13: memref<2x10x256xf32, #tpu.memory_space<vmem>>, %arg14: memref<2x10x128xf32, #tpu.memory_space<vmem>>) attributes {dimension_semantics = [#tpu.dimension_semantics<parallel>], iteration_bounds = array<i64: 1>, scalar_prefetch = 0 : i64, scratch_operands = 2 : i64, tpu.core_type = #tpu.core_type<tc>, window_params = [{transform_indices = @transform_0, window_bounds = array<i64: 2, 8, 64>}, {transform_indices = @transform_1, window_bounds = array<i64: 2, 8, 128>}, {transform_indices = @transform_2, window_bounds = array<i64: 2, 1, 16>}, {pipeline_mode = #tpu.pipeline_mode<synchronous>, transform_indices = @transform_3, window_bounds = array<i64: 64, 128>}, {pipeline_mode = #tpu.pipeline_mode<synchronous>, transform_indices = @transform_4, window_bounds = array<i64: 1, 128>}, {pipeline_mode = #tpu.pipeline_mode<synchronous>, transform_indices = @transform_5, window_bounds = array<i64: 4, 256, 64>}, {pipeline_mode = #tpu.pipeline_mode<synchronous>, transform_indices = @transform_6, window_bounds = array<i64: 1, 64>}, {pipeline_mode = #tpu.pipeline_mode<synchronous>, transform_indices = @transform_7, window_bounds = array<i64: 16, 64>}, {pipeline_mode = #tpu.pipeline_mode<synchronous>, transform_indices = @transform_8, window_bounds = array<i64: 1, 64>}, {pipeline_mode = #tpu.pipeline_mode<synchronous>, transform_indices = @transform_9, window_bounds = array<i64: 4, 128, 64>}, {pipeline_mode = #tpu.pipeline_mode<synchronous>, transform_indices = @transform_10, window_bounds = array<i64: 1, 64>}, {transform_indices = @transform_11, window_bounds = array<i64: 2, 8, 128>}]} {
    %cst = arith.constant 0.000000e+00 : f32
    %0 = vector.broadcast %cst : f32 to vector<2x1x256xf32>
    %c0 = arith.constant 0 : index
    %c0_0 = arith.constant 0 : index
    %c0_1 = arith.constant 0 : index
    %1 = vector.load %arg13[%c0, %c0_0, %c0_1] : memref<2x10x256xf32, #tpu.memory_space<vmem>>, vector<2x1x256xf32>
    tpu.vector_store %arg13[%c0, %c0_0, %c0_1], %0 {strides = array<i32>} : memref<2x10x256xf32, #tpu.memory_space<vmem>>, vector<2x1x256xf32>,
    %cst_2 = arith.constant 0.000000e+00 : f32
    %2 = vector.broadcast %cst_2 : f32 to vector<2x1x256xf32>
    %c0_3 = arith.constant 0 : index
    %c9 = arith.constant 9 : index
    %c0_4 = arith.constant 0 : index
    %3 = vector.load %arg13[%c0_3, %c9, %c0_4] : memref<2x10x256xf32, #tpu.memory_space<vmem>>, vector<2x1x256xf32>
    tpu.vector_store %arg13[%c0_3, %c9, %c0_4], %2 {strides = array<i32>} : memref<2x10x256xf32, #tpu.memory_space<vmem>>, vector<2x1x256xf32>,
    %cst_5 = arith.constant 0.000000e+00 : f32
    %4 = vector.broadcast %cst_5 : f32 to vector<2x1x128xf32>
    %c0_6 = arith.constant 0 : index
    %c0_7 = arith.constant 0 : index
    %c0_8 = arith.constant 0 : index
    %5 = vector.load %arg14[%c0_6, %c0_7, %c0_8] : memref<2x10x128xf32, #tpu.memory_space<vmem>>, vector<2x1x128xf32>
    tpu.vector_store %arg14[%c0_6, %c0_7, %c0_8], %4 {strides = array<i32>} : memref<2x10x128xf32, #tpu.memory_space<vmem>>, vector<2x1x128xf32>,
    %cst_9 = arith.constant 0.000000e+00 : f32
    %6 = vector.broadcast %cst_9 : f32 to vector<2x1x128xf32>
    %c0_10 = arith.constant 0 : index
    %c9_11 = arith.constant 9 : index
    %c0_12 = arith.constant 0 : index
    %7 = vector.load %arg14[%c0_10, %c9_11, %c0_12] : memref<2x10x128xf32, #tpu.memory_space<vmem>>, vector<2x1x128xf32>
    tpu.vector_store %arg14[%c0_10, %c9_11, %c0_12], %6 {strides = array<i32>} : memref<2x10x128xf32, #tpu.memory_space<vmem>>, vector<2x1x128xf32>,
    %c0_13 = arith.constant 0 : index
    %c0_14 = arith.constant 0 : index
    %c0_15 = arith.constant 0 : index
    %8 = vector.load %arg1[%c0_13, %c0_14, %c0_15] : memref<2x8x64xf32, #tpu.memory_space<vmem>>, vector<2x8x64xf32>
    %9 = vector.shape_cast %8 : vector<2x8x64xf32> to vector<16x64xf32>
    %c0_16 = arith.constant 0 : index
    %c0_17 = arith.constant 0 : index
    %10 = vector.load %arg4[%c0_16, %c0_17] : memref<64x128xf32, #tpu.memory_space<vmem>>, vector<64x128xf32>
    %cst_18 = arith.constant dense<0.000000e+00> : vector<16x128xf32>
    %11 = tpu.matmul %9, %10, %cst_18 {dimension_numbers = #tpu.dot_dimension_numbers<[1], [0], [0], [1], [0, 0, 1, 1], [], []>} : vector<16x64xf32>, vector<64x128xf32>, vector<16x128xf32> -> vector<16x128xf32>
    %c0_19 = arith.constant 0 : index
    %c0_20 = arith.constant 0 : index
    %12 = vector.load %arg5[%c0_19, %c0_20] : memref<1x128xf32, #tpu.memory_space<vmem>>, vector<1x128xf32>
    %13 = vector.broadcast %12 : vector<1x128xf32> to vector<16x128xf32>
    %14 = arith.addf %11, %13 : vector<16x128xf32>
    %15 = vector.shape_cast %14 : vector<16x128xf32> to vector<2x8x128xf32>
    %c0_21 = arith.constant 0 : index
    %c1 = arith.constant 1 : index
    %c0_22 = arith.constant 0 : index
    %16 = vector.load %arg13[%c0_21, %c1, %c0_22] : memref<2x10x256xf32, #tpu.memory_space<vmem>>, vector<2x8x128xf32>
    tpu.vector_store %arg13[%c0_21, %c1, %c0_22], %15 {strides = array<i32>} : memref<2x10x256xf32, #tpu.memory_space<vmem>>, vector<2x8x128xf32>,
    %c0_23 = arith.constant 0 : index
    %c0_24 = arith.constant 0 : index
    %c0_25 = arith.constant 0 : index
    %17 = vector.load %arg2[%c0_23, %c0_24, %c0_25] : memref<2x8x128xf32, #tpu.memory_space<vmem>>, vector<2x8x128xf32>
    %c0_26 = arith.constant 0 : index
    %c1_27 = arith.constant 1 : index
    %c128 = arith.constant 128 : index
    %18 = vector.load %arg13[%c0_26, %c1_27, %c128] : memref<2x10x256xf32, #tpu.memory_space<vmem>>, vector<2x8x128xf32>
    tpu.vector_store %arg13[%c0_26, %c1_27, %c128], %17 {strides = array<i32>} : memref<2x10x256xf32, #tpu.memory_space<vmem>>, vector<2x8x128xf32>,
    %c0_28 = arith.constant 0 : index
    %c0_29 = arith.constant 0 : index
    %c0_30 = arith.constant 0 : index
    %19 = vector.load %arg13[%c0_28, %c0_29, %c0_30] : memref<2x10x256xf32, #tpu.memory_space<vmem>>, vector<2x8x256xf32>
    %20 = vector.shape_cast %19 : vector<2x8x256xf32> to vector<16x256xf32>
    %c0_31 = arith.constant 0 : index
    %c1_32 = arith.constant 1 : index
    %c0_33 = arith.constant 0 : index
    %21 = vector.load %arg13[%c0_31, %c1_32, %c0_33] : memref<2x10x256xf32, #tpu.memory_space<vmem>>, vector<2x8x256xf32>
    %22 = vector.shape_cast %21 : vector<2x8x256xf32> to vector<16x256xf32>
    %c0_34 = arith.constant 0 : index
    %c2 = arith.constant 2 : index
    %c0_35 = arith.constant 0 : index
    %23 = vector.load %arg13[%c0_34, %c2, %c0_35] : memref<2x10x256xf32, #tpu.memory_space<vmem>>, vector<2x8x256xf32>
    %24 = vector.shape_cast %23 : vector<2x8x256xf32> to vector<16x256xf32>
    %c0_36 = arith.constant 0 : index
    %c0_37 = arith.constant 0 : index
    %c0_38 = arith.constant 0 : index
    %25 = vector.load %arg6[%c0_36, %c0_37, %c0_38] : memref<4x256x64xf32, #tpu.memory_space<vmem>>, vector<1x256x64xf32>
    %26 = vector.shape_cast %25 : vector<1x256x64xf32> to vector<256x64xf32>
    %cst_39 = arith.constant dense<0.000000e+00> : vector<16x64xf32>
    %27 = tpu.matmul %20, %26, %cst_39 {dimension_numbers = #tpu.dot_dimension_numbers<[1], [0], [0], [1], [0, 0, 1, 1], [], []>} : vector<16x256xf32>, vector<256x64xf32>, vector<16x64xf32> -> vector<16x64xf32>
    %c1_40 = arith.constant 1 : index
    %c0_41 = arith.constant 0 : index
    %c0_42 = arith.constant 0 : index
    %28 = vector.load %arg6[%c1_40, %c0_41, %c0_42] : memref<4x256x64xf32, #tpu.memory_space<vmem>>, vector<1x256x64xf32>
    %29 = vector.shape_cast %28 : vector<1x256x64xf32> to vector<256x64xf32>
    %cst_43 = arith.constant dense<0.000000e+00> : vector<16x64xf32>
    %30 = tpu.matmul %22, %29, %cst_43 {dimension_numbers = #tpu.dot_dimension_numbers<[1], [0], [0], [1], [0, 0, 1, 1], [], []>} : vector<16x256xf32>, vector<256x64xf32>, vector<16x64xf32> -> vector<16x64xf32>
    %31 = arith.addf %27, %30 : vector<16x64xf32>
    %c2_44 = arith.constant 2 : index
    %c0_45 = arith.constant 0 : index
    %c0_46 = arith.constant 0 : index
    %32 = vector.load %arg6[%c2_44, %c0_45, %c0_46] : memref<4x256x64xf32, #tpu.memory_space<vmem>>, vector<1x256x64xf32>
    %33 = vector.shape_cast %32 : vector<1x256x64xf32> to vector<256x64xf32>
    %cst_47 = arith.constant dense<0.000000e+00> : vector<16x64xf32>
    %34 = tpu.matmul %22, %33, %cst_47 {dimension_numbers = #tpu.dot_dimension_numbers<[1], [0], [0], [1], [0, 0, 1, 1], [], []>} : vector<16x256xf32>, vector<256x64xf32>, vector<16x64xf32> -> vector<16x64xf32>
    %c3 = arith.constant 3 : index
    %c0_48 = arith.constant 0 : index
    %c0_49 = arith.constant 0 : index
    %35 = vector.load %arg6[%c3, %c0_48, %c0_49] : memref<4x256x64xf32, #tpu.memory_space<vmem>>, vector<1x256x64xf32>
    %36 = vector.shape_cast %35 : vector<1x256x64xf32> to vector<256x64xf32>
    %cst_50 = arith.constant dense<0.000000e+00> : vector<16x64xf32>
    %37 = tpu.matmul %24, %36, %cst_50 {dimension_numbers = #tpu.dot_dimension_numbers<[1], [0], [0], [1], [0, 0, 1, 1], [], []>} : vector<16x256xf32>, vector<256x64xf32>, vector<16x64xf32> -> vector<16x64xf32>
    %38 = arith.addf %34, %37 : vector<16x64xf32>
    %c0_51 = arith.constant 0 : index
    %c0_52 = arith.constant 0 : index
    %c0_53 = arith.constant 0 : index
    %39 = vector.load %arg3[%c0_51, %c0_52, %c0_53] : memref<2x1x16xf32, #tpu.memory_space<vmem>>, vector<2x1x16xf32>
    %40 = vector.shape_cast %39 : vector<2x1x16xf32> to vector<2x16xf32>
    %c0_54 = arith.constant 0 : index
    %c0_55 = arith.constant 0 : index
    %41 = vector.load %arg8[%c0_54, %c0_55] : memref<16x64xf32, #tpu.memory_space<vmem>>, vector<16x64xf32>
    %cst_56 = arith.constant dense<0.000000e+00> : vector<2x64xf32>
    %42 = tpu.matmul %40, %41, %cst_56 {dimension_numbers = #tpu.dot_dimension_numbers<[1], [0], [0], [1], [0, 0, 1, 1], [], []>} : vector<2x16xf32>, vector<16x64xf32>, vector<2x64xf32> -> vector<2x64xf32>
    %c0_57 = arith.constant 0 : index
    %c0_58 = arith.constant 0 : index
    %43 = vector.load %arg9[%c0_57, %c0_58] : memref<1x64xf32, #tpu.memory_space<vmem>>, vector<1x64xf32>
    %44 = vector.broadcast %43 : vector<1x64xf32> to vector<2x64xf32>
    %45 = arith.addf %42, %44 : vector<2x64xf32>
    %46 = vector.shape_cast %45 : vector<2x64xf32> to vector<2x1x64xf32>
    %c0_59 = arith.constant 0 : index
    %c0_60 = arith.constant 0 : index
    %47 = vector.load %arg7[%c0_59, %c0_60] : memref<1x64xf32, #tpu.memory_space<vmem>>, vector<1x64xf32>
    %48 = vector.shape_cast %31 : vector<16x64xf32> to vector<2x8x64xf32>
    %49 = vector.shape_cast %47 : vector<1x64xf32> to vector<1x1x64xf32>
    %50 = vector.broadcast %49 : vector<1x1x64xf32> to vector<2x8x64xf32>
    %51 = arith.addf %48, %50 : vector<2x8x64xf32>
    %cst_61 = arith.constant 0.000000e+00 : f32
    %52 = vector.broadcast %cst_61 : f32 to vector<2x8x64xf32>
    %53 = arith.maximumf %51, %52 : vector<2x8x64xf32>
    %54 = vector.broadcast %46 : vector<2x1x64xf32> to vector<2x8x64xf32>
    %55 = arith.addf %53, %54 : vector<2x8x64xf32>
    %56 = vector.shape_cast %38 : vector<16x64xf32> to vector<2x8x64xf32>
    %57 = vector.shape_cast %47 : vector<1x64xf32> to vector<1x1x64xf32>
    %58 = vector.broadcast %57 : vector<1x1x64xf32> to vector<2x8x64xf32>
    %59 = arith.addf %56, %58 : vector<2x8x64xf32>
    %cst_62 = arith.constant 0.000000e+00 : f32
    %60 = vector.broadcast %cst_62 : f32 to vector<2x8x64xf32>
    %61 = arith.maximumf %59, %60 : vector<2x8x64xf32>
    %62 = vector.broadcast %46 : vector<2x1x64xf32> to vector<2x8x64xf32>
    %63 = arith.addf %61, %62 : vector<2x8x64xf32>
    %64 = tpu.concatenate %55, %63 in 2 : vector<2x8x64xf32>, vector<2x8x64xf32> -> vector<2x8x128xf32>
    %c0_63 = arith.constant 0 : index
    %c1_64 = arith.constant 1 : index
    %c0_65 = arith.constant 0 : index
    %65 = vector.load %arg14[%c0_63, %c1_64, %c0_65] : memref<2x10x128xf32, #tpu.memory_space<vmem>>, vector<2x8x128xf32>
    tpu.vector_store %arg14[%c0_63, %c1_64, %c0_65], %64 {strides = array<i32>} : memref<2x10x128xf32, #tpu.memory_space<vmem>>, vector<2x8x128xf32>,
    %c0_66 = arith.constant 0 : index
    %c0_67 = arith.constant 0 : index
    %c0_68 = arith.constant 0 : index
    %66 = vector.load %arg14[%c0_66, %c0_67, %c0_68] : memref<2x10x128xf32, #tpu.memory_space<vmem>>, vector<2x8x128xf32>
    %67 = vector.shape_cast %66 : vector<2x8x128xf32> to vector<16x128xf32>
    %c0_69 = arith.constant 0 : index
    %c1_70 = arith.constant 1 : index
    %c0_71 = arith.constant 0 : index
    %68 = vector.load %arg14[%c0_69, %c1_70, %c0_71] : memref<2x10x128xf32, #tpu.memory_space<vmem>>, vector<2x8x128xf32>
    %69 = vector.shape_cast %68 : vector<2x8x128xf32> to vector<16x128xf32>
    %c0_72 = arith.constant 0 : index
    %c2_73 = arith.constant 2 : index
    %c0_74 = arith.constant 0 : index
    %70 = vector.load %arg14[%c0_72, %c2_73, %c0_74] : memref<2x10x128xf32, #tpu.memory_space<vmem>>, vector<2x8x128xf32>
    %71 = vector.shape_cast %70 : vector<2x8x128xf32> to vector<16x128xf32>
    %c0_75 = arith.constant 0 : index
    %c0_76 = arith.constant 0 : index
    %c0_77 = arith.constant 0 : index
    %72 = vector.load %arg10[%c0_75, %c0_76, %c0_77] : memref<4x128x64xf32, #tpu.memory_space<vmem>>, vector<1x128x64xf32>
    %73 = vector.shape_cast %72 : vector<1x128x64xf32> to vector<128x64xf32>
    %cst_78 = arith.constant dense<0.000000e+00> : vector<16x64xf32>
    %74 = tpu.matmul %67, %73, %cst_78 {dimension_numbers = #tpu.dot_dimension_numbers<[1], [0], [0], [1], [0, 0, 1, 1], [], []>} : vector<16x128xf32>, vector<128x64xf32>, vector<16x64xf32> -> vector<16x64xf32>
    %c1_79 = arith.constant 1 : index
    %c0_80 = arith.constant 0 : index
    %c0_81 = arith.constant 0 : index
    %75 = vector.load %arg10[%c1_79, %c0_80, %c0_81] : memref<4x128x64xf32, #tpu.memory_space<vmem>>, vector<1x128x64xf32>
    %76 = vector.shape_cast %75 : vector<1x128x64xf32> to vector<128x64xf32>
    %cst_82 = arith.constant dense<0.000000e+00> : vector<16x64xf32>
    %77 = tpu.matmul %69, %76, %cst_82 {dimension_numbers = #tpu.dot_dimension_numbers<[1], [0], [0], [1], [0, 0, 1, 1], [], []>} : vector<16x128xf32>, vector<128x64xf32>, vector<16x64xf32> -> vector<16x64xf32>
    %78 = arith.addf %74, %77 : vector<16x64xf32>
    %c2_83 = arith.constant 2 : index
    %c0_84 = arith.constant 0 : index
    %c0_85 = arith.constant 0 : index
    %79 = vector.load %arg10[%c2_83, %c0_84, %c0_85] : memref<4x128x64xf32, #tpu.memory_space<vmem>>, vector<1x128x64xf32>
    %80 = vector.shape_cast %79 : vector<1x128x64xf32> to vector<128x64xf32>
    %cst_86 = arith.constant dense<0.000000e+00> : vector<16x64xf32>
    %81 = tpu.matmul %69, %80, %cst_86 {dimension_numbers = #tpu.dot_dimension_numbers<[1], [0], [0], [1], [0, 0, 1, 1], [], []>} : vector<16x128xf32>, vector<128x64xf32>, vector<16x64xf32> -> vector<16x64xf32>
    %c3_87 = arith.constant 3 : index
    %c0_88 = arith.constant 0 : index
    %c0_89 = arith.constant 0 : index
    %82 = vector.load %arg10[%c3_87, %c0_88, %c0_89] : memref<4x128x64xf32, #tpu.memory_space<vmem>>, vector<1x128x64xf32>
    %83 = vector.shape_cast %82 : vector<1x128x64xf32> to vector<128x64xf32>
    %cst_90 = arith.constant dense<0.000000e+00> : vector<16x64xf32>
    %84 = tpu.matmul %71, %83, %cst_90 {dimension_numbers = #tpu.dot_dimension_numbers<[1], [0], [0], [1], [0, 0, 1, 1], [], []>} : vector<16x128xf32>, vector<128x64xf32>, vector<16x64xf32> -> vector<16x64xf32>
    %85 = arith.addf %81, %84 : vector<16x64xf32>
    %c0_91 = arith.constant 0 : index
    %c0_92 = arith.constant 0 : index
    %86 = vector.load %arg11[%c0_91, %c0_92] : memref<1x64xf32, #tpu.memory_space<vmem>>, vector<1x64xf32>
    %87 = vector.shape_cast %78 : vector<16x64xf32> to vector<2x8x64xf32>
    %88 = vector.shape_cast %86 : vector<1x64xf32> to vector<1x1x64xf32>
    %89 = vector.broadcast %88 : vector<1x1x64xf32> to vector<2x8x64xf32>
    %90 = arith.addf %87, %89 : vector<2x8x64xf32>
    %cst_93 = arith.constant 0.000000e+00 : f32
    %91 = vector.broadcast %cst_93 : f32 to vector<2x8x64xf32>
    %92 = arith.maximumf %90, %91 : vector<2x8x64xf32>
    %93 = vector.shape_cast %85 : vector<16x64xf32> to vector<2x8x64xf32>
    %94 = vector.shape_cast %86 : vector<1x64xf32> to vector<1x1x64xf32>
    %95 = vector.broadcast %94 : vector<1x1x64xf32> to vector<2x8x64xf32>
    %96 = arith.addf %93, %95 : vector<2x8x64xf32>
    %cst_94 = arith.constant 0.000000e+00 : f32
    %97 = vector.broadcast %cst_94 : f32 to vector<2x8x64xf32>
    %98 = arith.maximumf %96, %97 : vector<2x8x64xf32>
    %99 = tpu.concatenate %92, %98 in 2 : vector<2x8x64xf32>, vector<2x8x64xf32> -> vector<2x8x128xf32>
    %c0_95 = arith.constant 0 : index
    %c0_96 = arith.constant 0 : index
    %c0_97 = arith.constant 0 : index
    %100 = vector.load %arg12[%c0_95, %c0_96, %c0_97] : memref<2x8x128xf32, #tpu.memory_space<vmem>>, vector<2x8x128xf32>
    tpu.vector_store %arg12[%c0_95, %c0_96, %c0_97], %99 {strides = array<i32>} : memref<2x8x128xf32, #tpu.memory_space<vmem>>, vector<2x8x128xf32>,
    return
  }
  func.func @transform_0(%arg0: i32) -> (i32, i32, i32) {
    %c0_i32 = arith.constant 0 : i32
    %c0_i32_0 = arith.constant 0 : i32
    %c0_i32_1 = arith.constant 0 : i32
    return %arg0, %c0_i32, %c0_i32_0 : i32, i32, i32
  }
  func.func @transform_1(%arg0: i32) -> (i32, i32, i32) {
    %c0_i32 = arith.constant 0 : i32
    %c0_i32_0 = arith.constant 0 : i32
    %c0_i32_1 = arith.constant 0 : i32
    return %arg0, %c0_i32, %c0_i32_0 : i32, i32, i32
  }
  func.func @transform_2(%arg0: i32) -> (i32, i32, i32) {
    %c0_i32 = arith.constant 0 : i32
    %c0_i32_0 = arith.constant 0 : i32
    %c0_i32_1 = arith.constant 0 : i32
    return %arg0, %c0_i32, %c0_i32_0 : i32, i32, i32
  }
  func.func @transform_3(%arg0: i32) -> (i32, i32) {
    %c0_i32 = arith.constant 0 : i32
    %c0_i32_0 = arith.constant 0 : i32
    %c0_i32_1 = arith.constant 0 : i32
    return %c0_i32, %c0_i32_0 : i32, i32
  }
  func.func @transform_4(%arg0: i32) -> (i32, i32) {
    %c0_i32 = arith.constant 0 : i32
    %c0_i32_0 = arith.constant 0 : i32
    %c0_i32_1 = arith.constant 0 : i32
    return %c0_i32, %c0_i32_0 : i32, i32
  }
  func.func @transform_5(%arg0: i32) -> (i32, i32, i32) {
    %c0_i32 = arith.constant 0 : i32
    %c0_i32_0 = arith.constant 0 : i32
    %c0_i32_1 = arith.constant 0 : i32
    %c0_i32_2 = arith.constant 0 : i32
    return %c0_i32, %c0_i32_0, %c0_i32_1 : i32, i32, i32
  }
  func.func @transform_6(%arg0: i32) -> (i32, i32) {
    %c0_i32 = arith.constant 0 : i32
    %c0_i32_0 = arith.constant 0 : i32
    %c0_i32_1 = arith.constant 0 : i32
    return %c0_i32, %c0_i32_0 : i32, i32
  }
  func.func @transform_7(%arg0: i32) -> (i32, i32) {
    %c0_i32 = arith.constant 0 : i32
    %c0_i32_0 = arith.constant 0 : i32
    %c0_i32_1 = arith.constant 0 : i32
    return %c0_i32, %c0_i32_0 : i32, i32
  }
  func.func @transform_8(%arg0: i32) -> (i32, i32) {
    %c0_i32 = arith.constant 0 : i32
    %c0_i32_0 = arith.constant 0 : i32
    %c0_i32_1 = arith.constant 0 : i32
    return %c0_i32, %c0_i32_0 : i32, i32
  }
  func.func @transform_9(%arg0: i32) -> (i32, i32, i32) {
    %c0_i32 = arith.constant 0 : i32
    %c0_i32_0 = arith.constant 0 : i32
    %c0_i32_1 = arith.constant 0 : i32
    %c0_i32_2 = arith.constant 0 : i32
    return %c0_i32, %c0_i32_0, %c0_i32_1 : i32, i32, i32
  }
  func.func @transform_10(%arg0: i32) -> (i32, i32) {
    %c0_i32 = arith.constant 0 : i32
    %c0_i32_0 = arith.constant 0 : i32
    %c0_i32_1 = arith.constant 0 : i32
    return %c0_i32, %c0_i32_0 : i32, i32
  }
  func.func @transform_11(%arg0: i32) -> (i32, i32, i32) {
    %c0_i32 = arith.constant 0 : i32
    %c0_i32_0 = arith.constant 0 : i32
    %c0_i32_1 = arith.constant 0 : i32
    return %arg0, %c0_i32, %c0_i32_0 : i32, i32, i32
  }
}

</mosaic_0001>

<bundles_post_ra>
// kernel: upsample_forward_packed.1
= control target key start
LH: loop header
LB: loop body
LE: loop exit
PB: predicated region body
PF: predicated region fallthrough
CT: control target
= control target key end

     0   :  { %vm74_vm0 = vcmask 523264   ;;  %vm198_vm2 = vcmask 1046528   ;;  %vm231_vm3 = vcmask 1045504   ;;  %vm2089_vm4 = vmmov 0   ;;  %s2090_s21 = smov 64   ;;  %s2860_s3 = inlined_call_operand.vmem [shape: f32[64,128], index: 3, kind: input, shape index: {}]   ;;  %s2861_s0 = inlined_call_operand.vmem [shape: f32[2,8,64], index: 0, kind: input, shape index: {}]   ;;  %s2862_s5 = inlined_call_operand.vmem [shape: f32[4,256,64], index: 5, kind: input, shape index: {}]   ;;  %s2863_s1 = inlined_call_operand.vmem [shape: f32[2,8,128], index: 1, kind: input, shape index: {}]   ;;  %s2864_s4 = inlined_call_operand.vmem [shape: f32[1,128], index: 4, kind: input, shape index: {}]   ;;  %s2865_s2 = inlined_call_operand.vmem [shape: f32[2,1,16], index: 2, kind: input, shape index: {}]   ;;  %s2866_s7 = inlined_call_operand.vmem [shape: f32[16,64], index: 7, kind: input, shape index: {}]   ;;  %s2867_s9 = inlined_call_operand.vmem [shape: f32[4,128,64], index: 9, kind: input, shape index: {}]   ;;  %s2868_s6 = inlined_call_operand.vmem [shape: f32[1,64], index: 6, kind: input, shape index: {}]   ;;  %s2869_s8 = inlined_call_operand.vmem [shape: f32[1,64], index: 8, kind: input, shape index: {}]   ;;  %s2870_s10 = inlined_call_operand.vmem [shape: f32[1,64], index: 10, kind: input, shape index: {}]   ;;  %s2871_s11 = inlined_call_operand.vmem [shape: f32[2,8,128], index: 11, kind: output, shape index: {}]  }
   0x1   :  { %v59_v0 = vld [vmem:[%s2860_s3] sm:$0xff]  ;;  %v60_v1 = vld [vmem:[%s2860_s3 + $0x8] sm:$0xff]  ;;  %v61_v2 = vld [vmem:[%s2860_s3 + $0x10] sm:$0xff]  ;;  %vm707_vm5 = vcmask 130048  }
   0x2   :  { %v1802_v3 = vpack.c.bf16 %v60_v1, %v59_v0  ;;  %v62_v4 = vld [vmem:[%s2860_s3 + $0x18] sm:$0xff]  ;;  %v63_v6 = vld [vmem:[%s2860_s3 + $0x20] sm:$0xff]  ;;  %v64_v7 = vld [vmem:[%s2860_s3 + $0x28] sm:$0xff] }
   0x3   :  { %v1806_v5 = vpack.c.bf16 %v62_v4, %v61_v2  ;;  %v57_v8 = vld [vmem:[%s2861_s0] sm:$0xff]  ;;  %v1810_v10 = vpack.c.bf16 %v64_v7, %v63_v6  ;;  %v1268_v11 = vld [vmem:[%s2862_s5 + $0x188] sm:$0xff]  ;;  %v65_v14 = vld [vmem:[%s2860_s3 + $0x30] sm:$0xff] }
   0x4   :  { %1803 = vmatprep.subr.bf16.mxu0 %v1802_v3  ;;  %1652 = vmatprep.mubr.msk.f32.mxu0 %vm74_vm0, %v57_v8  ;;  %v1267_v9 = vld [vmem:[%s2862_s5 + $0x180] sm:$0xff]  ;;  %v1252_v13 = vld [vmem:[%s2862_s5 + $0x108] sm:$0xff]  ;;  %v66_v15 = vld [vmem:[%s2860_s3 + $0x38] sm:$0xff] }
   0x5   :  { %1805 = vmatpush3.bf16.msra.mxu0 %v1802_v3  ;;  %v1251_v12 = vld [vmem:[%s2862_s5 + $0x100] sm:$0xff]  ;;  %v1818_v16 = vpack.c.bf16 %v1268_v11, %v1267_v9  ;;  %v1269_v18 = vld [vmem:[%s2862_s5 + $0x190] sm:$0xff]  ;;  %v1270_v19 = vld [vmem:[%s2862_s5 + $0x198] sm:$0xff]  ;;  %v1814_v23 = vpack.c.bf16 %v66_v15, %v65_v14 }
   0x6   :  { %1807 = vmatprep.subr.bf16.mxu0 %v1806_v5  ;;  %v1820_v17 = vpack.c.bf16 %v1252_v13, %v1251_v12  ;;  %v1822_v20 = vpack.c.bf16 %v1270_v19, %v1269_v18  ;;  %v1253_v21 = vld [vmem:[%s2862_s5 + $0x110] sm:$0xff]  ;;  %v1254_v22 = vld [vmem:[%s2862_s5 + $0x118] sm:$0xff]  ;;  %v264_v24 = vld [vmem:[%s2862_s5 + $0x80] sm:$0xff] }
   0x7   :  { %1819 = vmatprep.subr.bf16.mxu1 %v1818_v16  ;;  %v265_v25 = vld [vmem:[%s2862_s5 + $0x88] sm:$0xff]  ;;  %v1824_v26 = vpack.c.bf16 %v1254_v22, %v1253_v21  ;;  %v1271_v27 = vld [vmem:[%s2862_s5 + $0x1a0] sm:$0xff]  ;;  %v1273_v33 = vld [vmem:[%s2862_s5 + $0x1b0] sm:$0xff]  ;;  %v38_v22 = vlaneseq }
   0x8   :  { %1821 = vmatpush3.bf16.msra.mxu1 %v1820_v17  ;;  %v1272_v28 = vld [vmem:[%s2862_s5 + $0x1a8] sm:$0xff]  ;;  %v1255_v29 = vld [vmem:[%s2862_s5 + $0x120] sm:$0xff]  ;;  %v1850_v34 = vpack.c.bf16 %v265_v25, %v264_v24  ;;  %v266_v36 = vld [vmem:[%s2862_s5 + $0x90] sm:$0xff] }
   0x9   :  { %1809 = vmatpush3.bf16.msra.mxu0 %v1806_v5  ;;  %1823 = vmatprep.subr.bf16.mxu1 %v1822_v20  ;;  %v1826_v30 = vpack.c.bf16 %v1272_v28, %v1271_v27  ;;  %v1256_v31 = vld [vmem:[%s2862_s5 + $0x128] sm:$0xff]  ;;  %v248_v32 = vld [vmem:[%s2862_s5] sm:$0xff]  ;;  %v1274_v38 = vld [vmem:[%s2862_s5 + $0x1b8] sm:$0xff]  ;;  %vm40_vm1 = vcmp.lt.s32.totalorder %v38_v22, 256 }
   0xa   :  { %1811 = vmatprep.subr.bf16.mxu0 %v1810_v10  ;;  %v249_v35 = vld [vmem:[%s2862_s5 + $0x8] sm:$0xff]  ;;  %v1828_v37 = vpack.c.bf16 %v1256_v31, %v1255_v29  ;;  %v267_v39 = vld [vmem:[%s2862_s5 + $0x98] sm:$0xff]  ;;  %v1830_v40 = vpack.c.bf16 %v1274_v38, %v1273_v33  ;;  %v1257_v41 = vld [vmem:[%s2862_s5 + $0x130] sm:$0xff] }
   0xb   :  { %v1258_v42 = vld [vmem:[%s2862_s5 + $0x138] sm:$0xff]  ;;  %v58_v43 = vld [vmem:[%s2861_s0 + $0x8] sm:$0xff]  ;;  %v1852_v44 = vpack.c.bf16 %v249_v35, %v248_v32  ;;  %v1854_v45 = vpack.c.bf16 %v267_v39, %v266_v36  ;;  %v250_v46 = vld [vmem:[%s2862_s5 + $0x10] sm:$0xff]  ;;  %v2086_v32 = vmov 0.0  }
   0xc   :  { %1825 = vmatpush3.bf16.msra.mxu1 %v1824_v26  ;;  %v251_v47 = vld [vmem:[%s2862_s5 + $0x18] sm:$0xff]  ;;  %v1832_v48 = vpack.c.bf16 %v1258_v42, %v1257_v41  ;;  %v268_v49 = vld [vmem:[%s2862_s5 + $0xa0] sm:$0xff]  ;;  %v269_v50 = vld [vmem:[%s2862_s5 + $0xa8] sm:$0xff]  ;;  %42 = vst.msk [vmem:[#allocation2] ss:$8 sm:$0x3] %vm40_vm1, %v2086_v32 }
   0xd   :  { %1813 = vmatpush3.bf16.msra.mxu0 %v1810_v10  ;;  %1827 = vmatprep.subr.bf16.mxu1 %v1826_v30  ;;  %v1856_v51 = vpack.c.bf16 %v251_v47, %v250_v46  ;;  %v1858_v52 = vpack.c.bf16 %v269_v50, %v268_v49  ;;  %v252_v53 = vld [vmem:[%s2862_s5 + $0x20] sm:$0xff]  ;;  %v253_v54 = vld [vmem:[%s2862_s5 + $0x28] sm:$0xff]  ;;  %v270_v55 = vld [vmem:[%s2862_s5 + $0xb0] sm:$0xff]  ;;  %45 = vst.msk [vmem:[#allocation2 + $0x20] ss:$8 sm:$0x3] %vm40_vm1, %v2086_v32 }
   0xe   :  { %1815 = vmatprep.subr.bf16.mxu0 %v1814_v23  ;;  %v271_v56 = vld [vmem:[%s2862_s5 + $0xb8] sm:$0xff]  ;;  %v1860_v57 = vpack.c.bf16 %v253_v54, %v252_v53  ;;  %v254_v59 = vld [vmem:[%s2862_s5 + $0x30] sm:$0xff]  ;;  %v272_v61 = vld [vmem:[%s2862_s5 + $0xc0] sm:$0xff]  ;;  %48 = vst.msk [vmem:[#allocation2 + $0x11] ss:$8 sm:$0x3] %vm40_vm1, %v2086_v32 }
   0xf   :  { %v1862_v58 = vpack.c.bf16 %v271_v56, %v270_v55  ;;  %v255_v60 = vld [vmem:[%s2862_s5 + $0x38] sm:$0xff]  ;;  %v273_v62 = vld [vmem:[%s2862_s5 + $0xc8] sm:$0xff]  ;;  %v256_v1 = vld [vmem:[%s2862_s5 + $0x40] sm:$0xff]  ;;  %51 = vst.msk [vmem:[#allocation2 + $0x31] ss:$8 sm:$0x3] %vm40_vm1, %v2086_v32 }
  0x10   :  { %1829 = vmatpush3.bf16.msra.mxu1 %v1828_v37  ;;  %v1864_v63 = vpack.c.bf16 %v255_v60, %v254_v59  ;;  %v1866_v0 = vpack.c.bf16 %v273_v62, %v272_v61  ;;  %v257_v2 = vld [vmem:[%s2862_s5 + $0x48] sm:$0xff]  ;;  %v1275_v4 = vld [vmem:[%s2862_s5 + $0x1c0] sm:$0xff]  ;;  %v274_v9 = vld [vmem:[%s2862_s5 + $0xd0] sm:$0xff]  ;;  %53 = vst [vmem:[#allocation3] sm:$0x1] %v2086_v32 }
  0x11   :  { %1817 = vmatpush3.bf16.msra.mxu0 %v1814_v23  ;;  %1831 = vmatprep.subr.bf16.mxu1 %v1830_v40  ;;  %v1868_v3 = vpack.c.bf16 %v257_v2, %v256_v1  ;;  %v1276_v5 = vld [vmem:[%s2862_s5 + $0x1c8] sm:$0xff]  ;;  %v1259_v7 = vld [vmem:[%s2862_s5 + $0x140] sm:$0xff]  ;;  %v275_v11 = vld [vmem:[%s2862_s5 + $0xd8] sm:$0xff]  ;;  %54 = vst [vmem:[#allocation3 + $0x10] sm:$0x1] %v2086_v32 }
  0x12   :  { %1851 = vmatprep.subr.bf16.mxu0 %v1850_v34  ;;  %v1834_v6 = vpack.c.bf16 %v1276_v5, %v1275_v4  ;;  %v1260_v8 = vld [vmem:[%s2862_s5 + $0x148] sm:$0xff]  ;;  %v258_v12 = vld [vmem:[%s2862_s5 + $0x50] sm:$0xff]  ;;  %v259_v13 = vld [vmem:[%s2862_s5 + $0x58] sm:$0xff]  ;;  %v1870_v14 = vpack.c.bf16 %v275_v11, %v274_v9  ;;  %55 = vst [vmem:[#allocation3 + $0x9] sm:$0x1] %v2086_v32 }
  0x13   :  { %v1836_v10 = vpack.c.bf16 %v1260_v8, %v1259_v7  ;;  %v1872_v15 = vpack.c.bf16 %v259_v13, %v258_v12  ;;  %v1277_v16 = vld [vmem:[%s2862_s5 + $0x1d0] sm:$0xff]  ;;  %v1278_v17 = vld [vmem:[%s2862_s5 + $0x1d8] sm:$0xff]  ;;  %v276_v21 = vld [vmem:[%s2862_s5 + $0xe0] sm:$0xff]  ;;  %56 = vst [vmem:[#allocation3 + $0x19] sm:$0x1] %v2086_v32 }
  0x14   :  { %1653 = vmatmul.mubr.msk.f32.vlgmr.msra.gmra.mrb[0].mxu0 %vm74_vm0, %v58_v43  ;;  %1833 = vmatpush3.bf16.msra.mxu1 %v1832_v48  ;;  %v1838_v18 = vpack.c.bf16 %v1278_v17, %v1277_v16  ;;  %v1261_v19 = vld [vmem:[%s2862_s5 + $0x150] sm:$0xff]  ;;  %v1262_v20 = vld [vmem:[%s2862_s5 + $0x158] sm:$0xff]  ;;  %v277_v24 = vld [vmem:[%s2862_s5 + $0xe8] sm:$0xff] }
  0x15   :  { %1853 = vmatpush3.bf16.msra.mxu0 %v1852_v44  ;;  %1835 = vmatprep.subr.bf16.mxu1 %v1834_v6  ;;  %v1840_v23 = vpack.c.bf16 %v1262_v20, %v1261_v19  ;;  %v260_v25 = vld [vmem:[%s2862_s5 + $0x60] sm:$0xff]  ;;  %v261_v26 = vld [vmem:[%s2862_s5 + $0x68] sm:$0xff]  ;;  %v1874_v27 = vpack.c.bf16 %v277_v24, %v276_v21  ;;  %v278_v37 = vld [vmem:[%s2862_s5 + $0xf0] sm:$0xff] }
  0x16   :  { %1855 = vmatprep.subr.bf16.mxu0 %v1854_v45  ;;  %v1876_v28 = vpack.c.bf16 %v261_v26, %v260_v25  ;;  %v166_v29 = vld [vmem:[%s2863_s1] sm:$0xff]  ;;  %v1280_v31 = vld [vmem:[%s2862_s5 + $0x1e8] sm:$0xff]  ;;  %v279_v39 = vld [vmem:[%s2862_s5 + $0xf8] sm:$0xff] }
  0x17   :  { %v1279_v30 = vld [vmem:[%s2862_s5 + $0x1e0] sm:$0xff]  ;;  %v170_v33 = vrot.slane %v166_v29, 7  ;;  %v1264_v36 = vld [vmem:[%s2862_s5 + $0x168] sm:$0xff]  ;;  %v262_v40 = vld [vmem:[%s2862_s5 + $0x70] sm:$0xff]  ;;  %v1878_v42 = vpack.c.bf16 %v279_v39, %v278_v37 }
  0x18   :  { %1837 = vmatpush3.bf16.msra.mxu1 %v1836_v10  ;;  %v1842_v34 = vpack.c.bf16 %v1280_v31, %v1279_v30  ;;  %v1263_v35 = vld [vmem:[%s2862_s5 + $0x160] sm:$0xff]  ;;  %v263_v41 = vld [vmem:[%s2862_s5 + $0x78] sm:$0xff]  ;;  %v1281_v44 = vld [vmem:[%s2862_s5 + $0x1f0] sm:$0xff] }
  0x19   :  { %1857 = vmatpush3.bf16.msra.mxu0 %v1856_v51  ;;  %1839 = vmatprep.subr.bf16.mxu1 %v1838_v18  ;;  %v1844_v38 = vpack.c.bf16 %v1264_v36, %v1263_v35  ;;  %174 = vst [vmem:[#allocation2 + $0x8] sm:$0xfe] %v170_v33  ;;  %175 = vst [vmem:[#allocation2 + $0x18] sm:$0x1] %v170_v33  ;;  %v1880_v43 = vpack.c.bf16 %v263_v41, %v262_v40  ;;  %v1282_v45 = vld [vmem:[%s2862_s5 + $0x1f8] sm:$0xff]  ;;  %v1265_v46 = vld [vmem:[%s2862_s5 + $0x170] sm:$0xff] }
  0x1a   :  { %1859 = vmatprep.subr.bf16.mxu0 %v1858_v52  ;;  %v1846_v47 = vpack.c.bf16 %v1282_v45, %v1281_v44  ;;  %v1266_v48 = vld [vmem:[%s2862_s5 + $0x178] sm:$0xff]  ;;  %v1299_v49 = vld [vmem:[%s2862_s5 + $0x280] sm:$0xff]  ;;  %v1300_v50 = vld [vmem:[%s2862_s5 + $0x288] sm:$0xff] }
  0x1b   :  { %v1848_v51 = vpack.c.bf16 %v1266_v48, %v1265_v46  ;;  %v1914_v52 = vpack.c.bf16 %v1300_v50, %v1299_v49  ;;  %v167_v53 = vld [vmem:[%s2863_s1 + $0x8] sm:$0xff]  ;;  %v1331_v60 = vld [vmem:[%s2862_s5 + $0x380] sm:$0xff]  ;;  %v1301_v9 = vld [vmem:[%s2862_s5 + $0x290] sm:$0xff] }
  0x1c   :  { %1841 = vmatpush3.bf16.msra.mxu1 %v1840_v23  ;;  %v171_v54 = vrot.slane %v167_v53, 7  ;;  %v1332_v61 = vld [vmem:[%s2862_s5 + $0x388] sm:$0xff]  ;;  %v1283_v7 = vld [vmem:[%s2862_s5 + $0x200] sm:$0xff]  ;;  %v1286_v16 = vld [vmem:[%s2862_s5 + $0x218] sm:$0xff] }
  0x1d   :  { %1861 = vmatpush3.bf16.msra.mxu0 %v1860_v57  ;;  %1843 = vmatprep.subr.bf16.mxu1 %v1842_v34  ;;  %v1882_v62 = vpack.c.bf16 %v1332_v61, %v1331_v60  ;;  %v1284_v8 = vld [vmem:[%s2862_s5 + $0x208] sm:$0xff]  ;;  %v1315_v12 = vld [vmem:[%s2862_s5 + $0x300] sm:$0xff]  ;;  %v1333_v17 = vld [vmem:[%s2862_s5 + $0x390] sm:$0xff] }
  0x1e   :  { %1863 = vmatprep.subr.bf16.mxu0 %v1862_v58  ;;  %176 = vst [vmem:[#allocation2 + $0x28] sm:$0xfe] %v171_v54  ;;  %177 = vst [vmem:[#allocation2 + $0x38] sm:$0x1] %v171_v54  ;;  %v1316_v13 = vld [vmem:[%s2862_s5 + $0x308] sm:$0xff]  ;;  %v1334_v18 = vld [vmem:[%s2862_s5 + $0x398] sm:$0xff]  ;;  %v1916_v20 = vpack.c.bf16 %v1284_v8, %v1283_v7 }
  0x1f   :  { %v1303_v19 = vld [vmem:[%s2862_s5 + $0x2a0] sm:$0xff]  ;;  %v1304_v25 = vld [vmem:[%s2862_s5 + $0x2a8] sm:$0xff]  ;;  %v1884_v37 = vpack.c.bf16 %v1316_v13, %v1315_v12  ;;  %v1886_v39 = vpack.c.bf16 %v1334_v18, %v1333_v17  ;;  %v1317_v40 = vld [vmem:[%s2862_s5 + $0x310] sm:$0xff] }
  0x20   :  { %1845 = vmatpush3.bf16.msra.mxu1 %v1844_v38  ;;  %v179_v55 = vld [vmem:[#allocation2 + $0x8] sm:$0xff]  ;;  %v185_v57 = vld [vmem:[#allocation2 + $0x18] sm:$0x1]  ;;  %v1305_v54 = vld [vmem:[%s2862_s5 + $0x2b0] sm:$0xff] }
  0x21   :  { %1865 = vmatpush3.bf16.msra.mxu0 %v1864_v63  ;;  %1847 = vmatprep.subr.bf16.mxu1 %v1846_v47  ;;  %v183_v56 = vld [vmem:[#allocation2 + $0x8] sm:$0xfe]  ;;  %v203_v59 = vrot.slane %v185_v57, 1  ;;  %v218_v30 = vld [vmem:[#allocation2 + $0x18] sm:$0x3]  ;;  %v1289_v61 = vld [vmem:[%s2862_s5 + $0x230] sm:$0xff] }
  0x22   :  { %1867 = vmatprep.subr.bf16.mxu0 %v1866_v0  ;;  %452 = vmatprep.mubr.f32.mxu0 %v179_v55  ;;  %v202_v58 = vrot.slane %v183_v56, 1  ;;  %v1248_v0 = vld [vmem:[%s2864_s4] ss:$0 sm:$0xff]  ;;  %v216_v26 = vld [vmem:[#allocation2 + $0x8] sm:$0xfc]  ;;  %v1318_v41 = vld [vmem:[%s2862_s5 + $0x318] sm:$0xff] }
  0x23   :  { %v235_v44 = vrot.slane %v216_v26, 2  ;;  %v236_v45 = vrot.slane %v218_v30, 2  ;;  %v1288_v50 = vld [vmem:[%s2862_s5 + $0x228] sm:$0xff]  ;;  %v1306_v55 = vld [vmem:[%s2862_s5 + $0x2b8] sm:$0xff]  ;;  %v1888_v56 = vpack.c.bf16 %v1318_v41, %v1317_v40  ;;  %v1291_v12 = vld [vmem:[%s2862_s5 + $0x240] sm:$0xff] }
  0x24   :  { %1849 = vmatpush3.bf16.msra.mxu1 %v1848_v51  ;;  %v2403_v63 = vsel %vm198_vm2, %v202_v58, %v203_v59  ;;  %v1335_v51 = vld [vmem:[%s2862_s5 + $0x3a0] sm:$0xff]  ;;  %v1320_v60 = vld [vmem:[%s2862_s5 + $0x328] sm:$0xff]  ;;  %v1310_v17 = vld [vmem:[%s2862_s5 + $0x2d8] sm:$0xff] }
  0x25   :  { %1869 = vmatpush3.bf16.msra.mxu0 %v1868_v3  ;;  %377 = vmatprep.mubr.f32.mxu1 %v2403_v63  ;;  %v187_v10 = vld [vmem:[#allocation2 + $0x28] sm:$0xfe]  ;;  %v189_v11 = vld [vmem:[#allocation2 + $0x38] sm:$0x1]  ;;  %v1319_v59 = vld [vmem:[%s2862_s5 + $0x320] sm:$0xff] }
  0x26   :  { %1871 = vmatprep.subr.bf16.mxu0 %v1870_v14  ;;  %1883 = vmatprep.subr.bf16.mxu1 %v1882_v62  ;;  %v1302_v14 = vld [vmem:[%s2862_s5 + $0x298] sm:$0xff]  ;;  %v181_v21 = vld [vmem:[#allocation2 + $0x28] sm:$0xff]  ;;  %v208_v23 = vrot.slane %v187_v10, 1  ;;  %v209_v24 = vrot.slane %v189_v11, 1  ;;  %v237_v62 = vsel %vm231_vm3, %v235_v44, %v236_v45  ;;  %v1892_v7 = vpack.c.bf16 %v1320_v60, %v1319_v59  ;;  %v1321_v10 = vld [vmem:[%s2862_s5 + $0x330] sm:$0xff] }
  0x27   :  { %v1322_v11 = vld [vmem:[%s2862_s5 + $0x338] sm:$0xff]  ;;  %v1292_v13 = vld [vmem:[%s2862_s5 + $0x248] sm:$0xff]  ;;  %v1343_v40 = vld [vmem:[%s2862_s5 + $0x3e0] sm:$0xff] }
  0x28   :  { %v2458_v47 = vsel %vm198_vm2, %v208_v23, %v209_v24  ;;  %v1896_v18 = vpack.c.bf16 %v1322_v11, %v1321_v10  ;;  %v1324_v23 = vld [vmem:[%s2862_s5 + $0x348] sm:$0xff]  ;;  %v1293_v24 = vld [vmem:[%s2862_s5 + $0x250] sm:$0xff]  ;;  %v1294_v26 = vld [vmem:[%s2862_s5 + $0x258] sm:$0xff] }
  0x29   :  { %1873 = vmatpush3.bf16.msra.mxu0 %v1872_v15  ;;  %v1285_v15 = vld [vmem:[%s2862_s5 + $0x210] sm:$0xff]  ;;  %v1312_v30 = vld [vmem:[%s2862_s5 + $0x2e8] sm:$0xff]  ;;  %v681_v10 = vld [vmem:[%s2866_s7] sm:$0xff] }
  0x2a   :  { %1875 = vmatprep.subr.bf16.mxu0 %v1874_v27  ;;  %v1918_v27 = vpack.c.bf16 %v1302_v14, %v1301_v9  ;;  %v1920_v38 = vpack.c.bf16 %v1286_v16, %v1285_v15  ;;  %v1339_v14 = vld [vmem:[%s2862_s5 + $0x3c0] sm:$0xff]  ;;  %v1340_v15 = vld [vmem:[%s2862_s5 + $0x3c8] sm:$0xff]  ;;  %v1309_v16 = vld [vmem:[%s2862_s5 + $0x2d0] sm:$0xff] }
  0x2b   :  { %v1344_v41 = vld [vmem:[%s2862_s5 + $0x3e8] sm:$0xff] }
  0x2d   :  { %1877 = vmatpush3.bf16.msra.mxu0 %v1876_v28 }
  0x2e   :  { %1879 = vmatprep.subr.bf16.mxu0 %v1878_v42  ;;  %v1922_v42 = vpack.c.bf16 %v1304_v25, %v1303_v19  ;;  %v1932_v19 = vpack.c.bf16 %v1292_v13, %v1291_v12  ;;  %v1934_v25 = vpack.c.bf16 %v1310_v17, %v1309_v16 }
  0x31   :  { %1881 = vmatpush3.bf16.msra.mxu0 %v1880_v43  ;;  %v1287_v43 = vld [vmem:[%s2862_s5 + $0x220] sm:$0xff] }
  0x32   :  { %1915 = vmatprep.subr.bf16.mxu0 %v1914_v52  ;;  %v1336_v52 = vld [vmem:[%s2862_s5 + $0x3a8] sm:$0xff]  ;;  %v1924_v57 = vpack.c.bf16 %v1288_v50, %v1287_v43  ;;  %v1314_v43 = vld [vmem:[%s2862_s5 + $0x2f8] sm:$0xff] }
  0x33   :  { %v1890_v58 = vpack.c.bf16 %v1336_v52, %v1335_v51  ;;  %v1328_v50 = vld [vmem:[%s2862_s5 + $0x368] sm:$0xff]  ;;  %v1297_v51 = vld [vmem:[%s2862_s5 + $0x270] sm:$0xff] }
  0xe7   :  { %v1654_v1 = vpop.f32.mrb[0].mxu0 }
  0xe8   :  { %v153_v2 = vadd.f32 %v1654_v1, %v1248_v0  ;;  %v147_v3 = vpop.f32.mrb[1].mxu0  ;;  %v1926_v1 = vpack.c.bf16 %v1306_v55, %v1305_v54  ;;  %v1345_v54 = vld [vmem:[%s2862_s5 + $0x3f0] sm:$0xff]  ;;  %v1346_v55 = vld [vmem:[%s2862_s5 + $0x3f8] sm:$0xff] }
  0xe9   :  { %v148_v4 = vadd.f32 %v1248_v0, %v147_v3  ;;  %v1337_v3 = vld [vmem:[%s2862_s5 + $0x3b0] sm:$0xff]  ;;  %v1910_v60 = vpack.c.bf16 %v1346_v55, %v1345_v54  ;;  %v1391_v54 = vld [vmem:[%s2867_s9 + $0x1c8] sm:$0xff] }
  0xea   :  { %v159_v5 = vrot.slane %v153_v2, 7  ;;  %v1290_v2 = vld [vmem:[%s2862_s5 + $0x238] sm:$0xff] }
  0xeb   :  { %v158_v6 = vrot.slane %v148_v4, 7  ;;  %v1338_v4 = vld [vmem:[%s2862_s5 + $0x3b8] sm:$0xff]  ;;  %v1928_v8 = vpack.c.bf16 %v1290_v2, %v1289_v61  ;;  %v1329_v61 = vld [vmem:[%s2862_s5 + $0x370] sm:$0xff] }
  0xec   :  { %164 = vst [vmem:[#allocation2 + $0x20] sm:$0xfe] %v159_v5  ;;  %165 = vst [vmem:[#allocation2 + $0x30] sm:$0x1] %v159_v5  ;;  %v1307_v5 = vld [vmem:[%s2862_s5 + $0x2c0] sm:$0xff]  ;;  %v1894_v9 = vpack.c.bf16 %v1338_v4, %v1337_v3 }
  0xed   :  { %162 = vst [vmem:[#allocation2] sm:$0xfe] %v158_v6  ;;  %163 = vst [vmem:[#allocation2 + $0x10] sm:$0x1] %v158_v6  ;;  %v1308_v6 = vld [vmem:[%s2862_s5 + $0x2c8] sm:$0xff] }
  0xee   :  { %v222_v2 = vld [vmem:[#allocation2 + $0x38] sm:$0x3] }
  0xef   :  { %v242_v13 = vrot.slane %v222_v2, 2 }
  0xf3   :  { %v186_v28 = vld [vmem:[#allocation2 + $0x20] sm:$0xfe]  ;;  %v188_v29 = vld [vmem:[#allocation2 + $0x30] sm:$0x1] }
  0xf4   :  { %v178_v31 = vld [vmem:[#allocation2] sm:$0xff]  ;;  %v184_v34 = vld [vmem:[#allocation2 + $0x10] sm:$0x1]  ;;  %v205_v48 = vrot.slane %v186_v28, 1  ;;  %v206_v49 = vrot.slane %v188_v29, 1  ;;  %v1342_v28 = vld [vmem:[%s2862_s5 + $0x3d8] sm:$0xff] }
  0xf5   :  { %v182_v33 = vld [vmem:[#allocation2] sm:$0xfe]  ;;  %453 = vmatmul.mubr.f32.vlgmr.msra.gmra.mrb[2].mxu0 %v178_v31  ;;  %v200_v36 = vrot.slane %v184_v34, 1  ;;  %v217_v4 = vld [vmem:[#allocation2 + $0x10] sm:$0x3] }
  0xf6   :  { %v199_v35 = vrot.slane %v182_v33, 1  ;;  %1917 = vmatpush3.bf16.msra.mxu0 %v1916_v20  ;;  %457 = vmatprep.mubr.f32.mxu0 %v181_v21  ;;  %v180_v53 = vld [vmem:[#allocation2 + $0x20] sm:$0xff]  ;;  %v2488_v0 = vsel %vm198_vm2, %v205_v48, %v206_v49  ;;  %v1898_v20 = vpack.c.bf16 %v1340_v15, %v1339_v14  ;;  %v1936_v33 = vpack.c.bf16 %v1294_v26, %v1293_v24  ;;  %v221_v15 = vld [vmem:[#allocation2 + $0x30] sm:$0x3] }
  0xf7   :  { %1919 = vmatprep.subr.bf16.mxu0 %v1918_v27  ;;  %v1323_v21 = vld [vmem:[%s2862_s5 + $0x340] sm:$0xff]  ;;  %v1341_v27 = vld [vmem:[%s2862_s5 + $0x3d0] sm:$0xff]  ;;  %v1906_v48 = vpack.c.bf16 %v1344_v41, %v1343_v40  ;;  %v233_v12 = vrot.slane %v217_v4, 2  ;;  %v239_v24 = vrot.slane %v221_v15, 2  ;;  %v1387_v40 = vld [vmem:[%s2867_s9 + $0x1a8] sm:$0xff] }
  0xf8   :  { %v2455_v46 = vsel %vm198_vm2, %v199_v35, %v200_v36  ;;  %v1311_v29 = vld [vmem:[%s2862_s5 + $0x2e0] sm:$0xff]  ;;  %v1900_v31 = vpack.c.bf16 %v1324_v23, %v1323_v21  ;;  %v1902_v34 = vpack.c.bf16 %v1342_v28, %v1341_v27  ;;  %v1325_v35 = vld [vmem:[%s2862_s5 + $0x350] sm:$0xff]  ;;  %v1326_v36 = vld [vmem:[%s2862_s5 + $0x358] sm:$0xff] }
  0xf9   :  { %378 = vmatmul.mubr.f32.vlgmr.msra.gmra.mrb[0].mxu1 %v2455_v46  ;;  %458 = vmatmul.mubr.f32.gmra.mrb[4].mxu0 %v180_v53  ;;  %v1904_v44 = vpack.c.bf16 %v1326_v36, %v1325_v35  ;;  %v1327_v49 = vld [vmem:[%s2862_s5 + $0x360] sm:$0xff]  ;;  %v1298_v53 = vld [vmem:[%s2862_s5 + $0x278] sm:$0xff] }
  0xfa   :  { %1885 = vmatpush3.bf16.msra.mxu1 %v1884_v37  ;;  %1921 = vmatpush3.bf16.msra.mxu0 %v1920_v38  ;;  %v1295_v37 = vld [vmem:[%s2862_s5 + $0x260] sm:$0xff]  ;;  %v1938_v38 = vpack.c.bf16 %v1312_v30, %v1311_v29  ;;  %v1944_v59 = vpack.c.bf16 %v1298_v53, %v1297_v51  ;;  %v1383_v29 = vld [vmem:[%s2867_s9 + $0x188] sm:$0xff]  ;;  %v1353_v30 = vld [vmem:[%s2867_s9 + $0x98] sm:$0xff] }
  0xfb   :  { %382 = vmatprep.mubr.f32.mxu1 %v2458_v47  ;;  %1887 = vmatprep.subr.bf16.mxu1 %v1886_v39  ;;  %v1296_v39 = vld [vmem:[%s2862_s5 + $0x268] sm:$0xff]  ;;  %v215_v3 = vld [vmem:[#allocation2] sm:$0xfc]  ;;  %v1385_v35 = vld [vmem:[%s2867_s9 + $0x198] sm:$0xff] }
  0xfc   :  { %1923 = vmatprep.subr.bf16.mxu0 %v1922_v42  ;;  %668 = vmatprep.mubr.f32.mxu0 %v2403_v63  ;;  %v1930_v63 = vpack.c.bf16 %v1308_v6, %v1307_v5  ;;  %v1313_v42 = vld [vmem:[%s2862_s5 + $0x2f0] sm:$0xff]  ;;  %v1940_v45 = vpack.c.bf16 %v1296_v39, %v1295_v37  ;;  %v2604_v6 = vshrl.u32 %v38_v22, 7  ;;  %v682_v22 = vld [vmem:[%s2866_s7 + $0x8] sm:$0xff]  ;;  %v232_v11 = vrot.slane %v215_v3, 2  ;;  %v219_v14 = vld [vmem:[#allocation2 + $0x20] sm:$0xfc] }
  0xfd   :  { %383 = vmatmul.mubr.f32.gmra.mrb[2].mxu1 %v2488_v0  ;;  %v1942_v52 = vpack.c.bf16 %v1314_v43, %v1313_v42  ;;  %v238_v23 = vrot.slane %v219_v14, 2  ;;  %v1350_v26 = vld [vmem:[%s2867_s9 + $0x80] sm:$0xff]  ;;  %v1356_v43 = vld [vmem:[%s2867_s9 + $0xb0] sm:$0xff]  ;;  %v1361_v14 = vld [vmem:[%s2867_s9 + $0xd8] sm:$0xff] }
  0xfe   :  { %1889 = vmatpush3.bf16.msra.mxu1 %v1888_v56  ;;  %593 = vmatprep.mubr.f32.mxu1 %v237_v62  ;;  %v2087_v56 = vmov 1966171168   ;;  %v1330_v62 = vld [vmem:[%s2862_s5 + $0x378] sm:$0xff]  ;;  %v1382_v27 = vld [vmem:[%s2867_s9 + $0x180] sm:$0xff] }
  0xff   :  { %1925 = vmatpush3.bf16.msra.mxu0 %v1924_v57  ;;  %1891 = vmatprep.subr.bf16.mxu1 %v1890_v58  ;;  %v694_v57 = vunpack.c.l.s4 %v2087_v56  ;;  %v1908_v58 = vpack.c.bf16 %v1328_v50, %v1327_v49  ;;  %v1354_v36 = vld [vmem:[%s2867_s9 + $0xa0] sm:$0xff] }
 0x100   :  { %1927 = vmatprep.subr.bf16.mxu0 %v1926_v1  ;;  %v220_v1 = vld [vmem:[#allocation2 + $0x28] sm:$0xfc]  ;;  %v1386_v39 = vld [vmem:[%s2867_s9 + $0x1a0] sm:$0xff] }
 0x101   :  { %v695_v5 = vunpack.c.0.s8 %v694_v57  ;;  %v2021_v42 = vpack.c.bf16 %v1387_v40, %v1386_v39  ;;  %v1358_v51 = vld [vmem:[%s2867_s9 + $0xc0] sm:$0xff] }
 0x102   :  { %1893 = vmatpush3.bf16.msra.mxu1 %v1892_v7  ;;  %v1912_v7 = vpack.c.bf16 %v1330_v62, %v1329_v61  ;;  %v1390_v53 = vld [vmem:[%s2867_s9 + $0x1c0] sm:$0xff] }
 0x103   :  { %1929 = vmatpush3.bf16.msra.mxu0 %v1928_v8  ;;  %1895 = vmatprep.subr.bf16.mxu1 %v1894_v9  ;;  %v679_v8 = vld [vmem:[%s2865_s2] sm:$0x1]  ;;  %v680_v9 = vld [vmem:[%s2865_s2 + $0x1] sm:$0x1]  ;;  %v2619_v17 = vsub.s32 %v695_v5, %v2604_v6  ;;  %v2029_v56 = vpack.c.bf16 %v1391_v54, %v1390_v53 }
 0x104   :  { %1931 = vmatprep.subr.bf16.mxu0 %v1930_v63  ;;  %v241_v63 = vrot.slane %v220_v1, 2  ;;  %v692_v16 = vcombine.low %v679_v8, %v680_v9  ;;  %v1349_v3 = vld [vmem:[%s2868_s6] ss:$0 sm:$0xff] }
 0x105   :  { %v1394_v40 = vld [vmem:[%s2867_s9 + $0x1e0] sm:$0xff] }
 0x106   :  { %1897 = vmatpush3.bf16.msra.mxu1 %v1896_v18  ;;  %v1947_v18 = vpack.c.bf16 %v682_v22, %v681_v10  ;;  %v243_v21 = vsel %vm231_vm3, %v241_v63, %v242_v13  ;;  %v1360_v13 = vld [vmem:[%s2867_s9 + $0xd0] sm:$0xff] }
 0x107   :  { %1933 = vmatpush3.bf16.msra.mxu0 %v1932_v19  ;;  %1899 = vmatprep.subr.bf16.mxu1 %v1898_v20  ;;  %v2088_v19 = vmov 0.0|0.0   ;;  %v234_v20 = vsel %vm231_vm3, %v232_v11, %v233_v12 }
 0x108   :  { %1935 = vmatprep.subr.bf16.mxu0 %v1934_v25  ;;  %v699_v25 = vrot.slane %v692_v16, %v2619_v17  ;;  %v1969_v16 = vpack.c.bf16 %v1361_v14, %v1360_v13  ;;  %v854_v13 = vld [vmem:[%s2867_s9 + $0x20] sm:$0xff]  ;;  %v855_v14 = vld [vmem:[%s2867_s9 + $0x28] sm:$0xff] }
 0x10a   :  { %1901 = vmatpush3.bf16.msra.mxu1 %v1900_v31  ;;  %v2013_v31 = vpack.c.bf16 %v1383_v29, %v1382_v27 }
 0x10b   :  { %1937 = vmatpush3.bf16.msra.mxu0 %v1936_v33  ;;  %1903 = vmatprep.subr.bf16.mxu1 %v1902_v34  ;;  %v1384_v34 = vld [vmem:[%s2867_s9 + $0x190] sm:$0xff] }
 0x10c   :  { %1939 = vmatprep.subr.bf16.mxu0 %v1938_v38  ;;  %v2017_v37 = vpack.c.bf16 %v1385_v35, %v1384_v34  ;;  %v1355_v38 = vld [vmem:[%s2867_s9 + $0xa8] sm:$0xff]  ;;  %v1365_v34 = vld [vmem:[%s2867_s9 + $0xf8] sm:$0xff] }
 0x10d   :  { %v1957_v41 = vpack.c.bf16 %v1355_v38, %v1354_v36 }
 0x10e   :  { %1905 = vmatpush3.bf16.msra.mxu1 %v1904_v44  ;;  %v1357_v44 = vld [vmem:[%s2867_s9 + $0xb8] sm:$0xff] }
 0x10f   :  { %1941 = vmatpush3.bf16.msra.mxu0 %v1940_v45  ;;  %1907 = vmatprep.subr.bf16.mxu1 %v1906_v48  ;;  %v1388_v45 = vld [vmem:[%s2867_s9 + $0x1b0] sm:$0xff]  ;;  %v1389_v48 = vld [vmem:[%s2867_s9 + $0x1b8] sm:$0xff]  ;;  %v1961_v49 = vpack.c.bf16 %v1357_v44, %v1356_v43  ;;  %v816_v44 = vsub.s32 0, %v2604_v6 }
 0x110   :  { %1943 = vmatprep.subr.bf16.mxu0 %v1942_v52  ;;  %v2025_v50 = vpack.c.bf16 %v1389_v48, %v1388_v45  ;;  %v1359_v52 = vld [vmem:[%s2867_s9 + $0xc8] sm:$0xff] }
 0x111   :  { %v1965_v55 = vpack.c.bf16 %v1359_v52, %v1358_v51  ;;  %v851_v51 = vld [vmem:[%s2867_s9 + $0x8] sm:$0xff] }
 0x112   :  { %1909 = vmatpush3.bf16.msra.mxu1 %v1908_v58 }
 0x113   :  { %1945 = vmatpush3.bf16.msra.mxu0 %v1944_v59  ;;  %1911 = vmatprep.subr.bf16.mxu1 %v1910_v60 }
 0x114   :  { %2014 = vmatprep.subr.bf16.mxu0 %v2013_v31 }
 0x116   :  { %1913 = vmatpush3.bf16.msra.mxu1 %v1912_v7  ;;  %669 = vmatmul.mubr.f32.vlgmr.msra.gmra.mrb[6].mxu0 %v2455_v46  ;;  %v240_v46 = vsel %vm231_vm3, %v238_v23, %v239_v24  ;;  %v1362_v24 = vld [vmem:[%s2867_s9 + $0xe0] sm:$0xff] }
 0x117   :  { %673 = vmatprep.mubr.f32.mxu0 %v2458_v47  ;;  %1946 = vmatprep.subr.bf16.mxu1 %v2088_v19  ;;  %v706_v47 = vrot.slane %v699_v25, %v2619_v17  ;;  %v1363_v25 = vld [vmem:[%s2867_s9 + $0xe8] sm:$0xff] }
 0x118   :  { %2016 = vmatpush3.bf16.msra.mxu0 %v2013_v31  ;;  %v1364_v31 = vld [vmem:[%s2867_s9 + $0xf0] sm:$0xff] }
 0x119   :  { %594 = vmatmul.mubr.f32.vlgmr.msra.gmra.mrb[4].mxu1 %v234_v20  ;;  %2018 = vmatprep.subr.bf16.mxu0 %v2017_v37 }
 0x11a   :  { %674 = vmatmul.mubr.f32.gmra.mrb[8].mxu0 %v2488_v0  ;;  %1948 = vmatpush3.bf16.msra.mxu1 %v1947_v18  ;;  %v1351_v0 = vld [vmem:[%s2867_s9 + $0x88] sm:$0xff] }
 0x11b   :  { %598 = vmatprep.mubr.f32.mxu1 %v243_v21  ;;  %v1949_v28 = vpack.c.bf16 %v1351_v0, %v1350_v26 }
 0x11c   :  { %2020 = vmatpush3.bf16.msra.mxu0 %v2017_v37  ;;  %v1977_v37 = vpack.c.bf16 %v1365_v34, %v1364_v31  ;;  %v860_v31 = vld [vmem:[%s2867_s9 + $0x50] sm:$0xff] }
 0x11d   :  { %599 = vmatmul.mubr.f32.gmra.mrb[6].mxu1 %v240_v46  ;;  %1950 = vmatprep.subr.bf16.mxu1 %v1949_v28 }
 0x11e   :  { %1659 = vmatprep.mubr.msk.f32.mxu1 %vm2089_vm4, %v2086_v32  ;;  %v1352_v32 = vld [vmem:[%s2867_s9 + $0x90] sm:$0xff]  ;;  %2022 = vmatprep.subr.bf16.mxu0 %v2021_v42 }
 0x11f   :  { %v1953_v33 = vpack.c.bf16 %v1353_v30, %v1352_v32  ;;  %v1392_v32 = vld [vmem:[%s2867_s9 + $0x1d0] sm:$0xff]  ;;  %v1393_v30 = vld [vmem:[%s2867_s9 + $0x1d8] sm:$0xff] }
 0x120   :  { %2024 = vmatpush3.bf16.msra.mxu0 %v2021_v42  ;;  %v850_v42 = vld [vmem:[%s2867_s9] sm:$0xff] }
 0x121   :  { %1660 = vmatmul.mubr.msk.f32.vlgmr.msra.gmra.mrb[8].mxu1 %vm707_vm5, %v706_v47  ;;  %2026 = vmatprep.subr.bf16.mxu0 %v2025_v50  ;;  %v1973_v47 = vpack.c.bf16 %v1363_v25, %v1362_v24  ;;  %v1981_v53 = vpack.c.bf16 %v851_v51, %v850_v42  ;;  %v1377_v42 = vld [vmem:[%s2867_s9 + $0x158] sm:$0xff] }
 0x122   :  { %1952 = vmatpush3.bf16.msra.mxu1 %v1949_v28  ;;  %v1347_v28 = vld [vmem:[%s2869_s8] ss:$0 sm:$0xff] }
 0x123   :  { %1954 = vmatprep.subr.bf16.mxu1 %v1953_v33 }
 0x124   :  { %2028 = vmatpush3.bf16.msra.mxu0 %v2025_v50  ;;  %v1397_v50 = vld [vmem:[%s2867_s9 + $0x1f8] sm:$0xff] }
 0x125   :  { %2030 = vmatprep.subr.bf16.mxu0 %v2029_v56 }
 0x126   :  { %1956 = vmatpush3.bf16.msra.mxu1 %v1953_v33  ;;  %v2033_v33 = vpack.c.bf16 %v1393_v30, %v1392_v32  ;;  %v1373_v32 = vld [vmem:[%s2867_s9 + $0x138] sm:$0xff] }
 0x127   :  { %1958 = vmatprep.subr.bf16.mxu1 %v1957_v41 }
 0x128   :  { %2032 = vmatpush3.bf16.msra.mxu0 %v2029_v56 }
 0x129   :  { %2034 = vmatprep.subr.bf16.mxu0 %v2033_v33 }
 0x12a   :  { %1960 = vmatpush3.bf16.msra.mxu1 %v1957_v41  ;;  %v1395_v41 = vld [vmem:[%s2867_s9 + $0x1e8] sm:$0xff] }
 0x12b   :  { %1962 = vmatprep.subr.bf16.mxu1 %v1961_v49  ;;  %v2037_v48 = vpack.c.bf16 %v1395_v41, %v1394_v40  ;;  %v1376_v41 = vld [vmem:[%s2867_s9 + $0x150] sm:$0xff] }
 0x12c   :  { %2036 = vmatpush3.bf16.msra.mxu0 %v2033_v33  ;;  %v861_v33 = vld [vmem:[%s2867_s9 + $0x58] sm:$0xff] }
 0x12d   :  { %2038 = vmatprep.subr.bf16.mxu0 %v2037_v48 }
 0x12e   :  { %1964 = vmatpush3.bf16.msra.mxu1 %v1961_v49  ;;  %v1396_v49 = vld [vmem:[%s2867_s9 + $0x1f0] sm:$0xff] }
 0x12f   :  { %1966 = vmatprep.subr.bf16.mxu1 %v1965_v55  ;;  %v2041_v52 = vpack.c.bf16 %v1397_v50, %v1396_v49  ;;  %v1378_v49 = vld [vmem:[%s2867_s9 + $0x160] sm:$0xff]  ;;  %v1379_v50 = vld [vmem:[%s2867_s9 + $0x168] sm:$0xff] }
 0x130   :  { %2040 = vmatpush3.bf16.msra.mxu0 %v2037_v48  ;;  %v2065_v48 = vpack.c.bf16 %v1377_v42, %v1376_v41 }
 0x131   :  { %2042 = vmatprep.subr.bf16.mxu0 %v2041_v52 }
 0x132   :  { %1968 = vmatpush3.bf16.msra.mxu1 %v1965_v55 }
 0x133   :  { %1970 = vmatprep.subr.bf16.mxu1 %v1969_v16 }
 0x134   :  { %2044 = vmatpush3.bf16.msra.mxu0 %v2041_v52  ;;  %v2069_v52 = vpack.c.bf16 %v1379_v50, %v1378_v49 }
 0x136   :  { %1972 = vmatpush3.bf16.msra.mxu1 %v1969_v16  ;;  %v1989_v16 = vpack.c.bf16 %v855_v14, %v854_v13 }
 0x137   :  { %1974 = vmatprep.subr.bf16.mxu1 %v1973_v47 }
 0x13a   :  { %1976 = vmatpush3.bf16.msra.mxu1 %v1973_v47  ;;  %v1371_v47 = vld [vmem:[%s2867_s9 + $0x128] sm:$0xff] }
 0x13b   :  { %1978 = vmatprep.subr.bf16.mxu1 %v1977_v37 }
 0x13e   :  { %1980 = vmatpush3.bf16.msra.mxu1 %v1977_v37  ;;  %v2001_v37 = vpack.c.bf16 %v861_v33, %v860_v31 }
 0x13f   :  { %1982 = vmatprep.subr.bf16.mxu1 %v1981_v53 }
 0x1c8   :  { %v1479_v57 = vpop.f32.mrb[2].mxu0 }
 0x1c9   :  { %v1480_v58 = vpop.f32.mrb[3].mxu0 }
 0x1ca   :  { %v1481_v59 = vadd.f32 %v1480_v58, %v1479_v57 }
 0x1cc   :  { %v1441_v60 = vpop.f32.mrb[0].mxu1  ;;  %v1482_v62 = vpop.f32.mrb[4].mxu0 }
 0x1cd   :  { %v1442_v61 = vpop.f32.mrb[1].mxu1  ;;  %v1483_v2 = vpop.f32.mrb[5].mxu0 }
 0x1ce   :  { %v1443_v1 = vadd.f32 %v1442_v61, %v1441_v60  ;;  %v1484_v4 = vadd.f32 %v1483_v2, %v1482_v62  ;;  %v1366_v60 = vld [vmem:[%s2867_s9 + $0x100] sm:$0xff]  ;;  %v1367_v61 = vld [vmem:[%s2867_s9 + $0x108] sm:$0xff] }
 0x1d0   :  { %v455_v5 = vadd.f32 %v1481_v59, %v1443_v1  ;;  %v1444_v7 = vpop.f32.mrb[2].mxu1  ;;  %v2045_v1 = vpack.c.bf16 %v1367_v61, %v1366_v60 }
 0x1d1   :  { %v1445_v8 = vpop.f32.mrb[3].mxu1 }
 0x1d2   :  { %v2693_v9 = vadd.f32 %v1349_v3, %v455_v5  ;;  %v1446_v10 = vadd.f32 %v1445_v8, %v1444_v7  ;;  %2046 = vmatprep.subr.bf16.mxu0 %v2045_v1 }
 0x1d4   :  { %v460_v22 = vadd.f32 %v1484_v4, %v1446_v10  ;;  %v812_v56 = vmax.f32 %v2693_v9, 0.0  ;;  %v852_v10 = vld [vmem:[%s2867_s9 + $0x10] sm:$0xff] }
 0x1d6   :  { %v2695_v11 = vadd.f32 %v1349_v3, %v460_v22  ;;  %v853_v22 = vld [vmem:[%s2867_s9 + $0x18] sm:$0xff] }
 0x1d8   :  { %v813_v62 = vmax.f32 %v2695_v11, 0.0 }
 0x1e9   :  { %v1555_v12 = vpop.f32.mrb[6].mxu0 }
 0x1ea   :  { %v1556_v63 = vpop.f32.mrb[7].mxu0 }
 0x1eb   :  { %v1557_v15 = vadd.f32 %v1556_v63, %v1555_v12  ;;  %v1985_v12 = vpack.c.bf16 %v853_v22, %v852_v10 }
 0x1ec   :  { %v1517_v18 = vpop.f32.mrb[4].mxu1 }
 0x1ed   :  { %v1518_v19 = vpop.f32.mrb[5].mxu1  ;;  %v1558_v20 = vpop.f32.mrb[8].mxu0 }
 0x1ee   :  { %v1519_v21 = vadd.f32 %v1518_v19, %v1517_v18  ;;  %v1559_v23 = vpop.f32.mrb[9].mxu0 }
 0x1ef   :  { %v1560_v46 = vadd.f32 %v1559_v23, %v1558_v20  ;;  %v1369_v20 = vld [vmem:[%s2867_s9 + $0x118] sm:$0xff] }
 0x1f0   :  { %v671_v26 = vadd.f32 %v1557_v15, %v1519_v21  ;;  %v1520_v0 = vpop.f32.mrb[6].mxu1  ;;  %v1368_v15 = vld [vmem:[%s2867_s9 + $0x110] sm:$0xff]  ;;  %v857_v23 = vld [vmem:[%s2867_s9 + $0x38] sm:$0xff] }
 0x1f1   :  { %v1521_v27 = vpop.f32.mrb[7].mxu1  ;;  %v856_v21 = vld [vmem:[%s2867_s9 + $0x30] sm:$0xff]  ;;  %v2049_v24 = vpack.c.bf16 %v1369_v20, %v1368_v15 }
 0x1f2   :  { %v1522_v29 = vadd.f32 %v1521_v27, %v1520_v0  ;;  %v826_v45 = vadd.f32 %v1349_v3, %v671_v26  ;;  %v1993_v26 = vpack.c.bf16 %v857_v23, %v856_v21  ;;  %v858_v0 = vld [vmem:[%s2867_s9 + $0x40] sm:$0xff]  ;;  %v859_v27 = vld [vmem:[%s2867_s9 + $0x48] sm:$0xff] }
 0x1f3   :  { %v1997_v30 = vpack.c.bf16 %v859_v27, %v858_v0 }
 0x1f4   :  { %v676_v35 = vadd.f32 %v1560_v46, %v1522_v29  ;;  %v776_v36 = vpop.f32.mrb[8].mxu1  ;;  %v828_v59 = vmax.f32 %v826_v45, 0.0  ;;  %v1370_v46 = vld [vmem:[%s2867_s9 + $0x120] sm:$0xff]  ;;  %v1372_v29 = vld [vmem:[%s2867_s9 + $0x130] sm:$0xff]  ;;  %v865_v45 = vld [vmem:[%s2867_s9 + $0x78] sm:$0xff] }
 0x1f5   :  { %v777_v38 = vadd.f32 %v1347_v28, %v776_v36  ;;  %v1661_v39 = vpop.f32.mrb[9].mxu1  ;;  %v2053_v28 = vpack.c.bf16 %v1371_v47, %v1370_v46  ;;  %v2057_v34 = vpack.c.bf16 %v1373_v32, %v1372_v29  ;;  %v1375_v36 = vld [vmem:[%s2867_s9 + $0x148] sm:$0xff] }
 0x1f6   :  { %v827_v54 = vadd.f32 %v1349_v3, %v676_v35  ;;  %v1374_v35 = vld [vmem:[%s2867_s9 + $0x140] sm:$0xff]  ;;  %v863_v39 = vld [vmem:[%s2867_s9 + $0x68] sm:$0xff] }
 0x1f7   :  { %v787_v43 = vrot.slane %v777_v38, %v2619_v17  ;;  %v862_v38 = vld [vmem:[%s2867_s9 + $0x60] sm:$0xff]  ;;  %v2061_v40 = vpack.c.bf16 %v1375_v36, %v1374_v35 }
 0x1f8   :  { %v829_v2 = vmax.f32 %v827_v54, 0.0  ;;  %v1381_v54 = vld [vmem:[%s2867_s9 + $0x178] sm:$0xff] }
 0x1f9   :  { %v788_v55 = vcombine.high %v787_v43, %v787_v43  ;;  %v795_v6 = vrot.slane %v787_v43, %v2619_v17  ;;  %v2005_v43 = vpack.c.bf16 %v863_v39, %v862_v38 }
 0x1fb   :  { %v802_v57 = vrot.slane %v788_v55, %v2619_v17  ;;  %v817_v58 = vrot.slane %v795_v6, %v816_v44 }
 0x1fd   :  { %v830_v3 = vadd.f32 %v828_v59, %v817_v58  ;;  %v824_v4 = vadd.f32 %v817_v58, %v812_v56  ;;  %v821_v5 = vrot.slane %v802_v57, %v816_v44  ;;  %v864_v44 = vld [vmem:[%s2867_s9 + $0x70] sm:$0xff]  ;;  %v1398_v56 = vld [vmem:[%s2870_s10] ss:$0 sm:$0xff] }
 0x1fe   :  { %v2009_v51 = vpack.c.bf16 %v865_v45, %v864_v44 }
 0x1ff   :  { %834 = vrot.lane.b32.xlu0 %v830_v3, %s2090_s21  ;;  %v831_v17 = vadd.f32 %v829_v2, %v821_v5  ;;  %v825_v7 = vadd.f32 %v821_v5, %v813_v62 }
 0x203   :  { %836 = vrot.lane.b32.xlu0 %v831_v17, %s2090_s21 }
 0x271   :  { %v835_v8 = vpop.permute.xlu0 %834 }
 0x272   :  { %v840_v9 = vsel %vm74_vm0, %v824_v4, %v835_v8 }
 0x273   :  { %842 = vst [vmem:[#allocation3 + $0x1] sm:$0xff] %v840_v9  ;;  %1694 = vmatprep.mubr.f32.mxu1 %v840_v9 }
 0x275   :  { %v837_v11 = vpop.permute.xlu0 %836 }
 0x276   :  { %v2764_v63 = vsel %vm74_vm0, %v825_v7, %v837_v11 }
 0x277   :  { %843 = vst [vmem:[#allocation3 + $0x11] sm:$0xff] %v2764_v63  ;;  %1695 = vmatmul.mubr.f32.vlgmr.msra.gmra.mrb[10].mxu1 %v2764_v63 }
 0x278   :  { %1984 = vmatpush3.bf16.msra.mxu1 %v1981_v53  ;;  %v1380_v53 = vld [vmem:[%s2867_s9 + $0x170] sm:$0xff] }
 0x279   :  { %1986 = vmatprep.subr.bf16.mxu1 %v1985_v12  ;;  %v2073_v55 = vpack.c.bf16 %v1381_v54, %v1380_v53 }
 0x27a   :  { %v848_v18 = vld [vmem:[#allocation3 + $0x2] sm:$0xff] }
 0x27b   :  { %v844_v19 = vld [vmem:[#allocation3] sm:$0xff]  ;;  %1764 = vmatprep.mubr.f32.mxu0 %v848_v18 }
 0x27c   :  { %1729 = vmatprep.mubr.f32.mxu1 %v844_v19  ;;  %1988 = vmatpush3.bf16.msra.mxu1 %v1985_v12 }
 0x27d   :  { %1990 = vmatprep.subr.bf16.mxu1 %v1989_v16 }
 0x27e   :  { %v849_v25 = vld [vmem:[#allocation3 + $0x12] sm:$0xff] }
 0x27f   :  { %1765 = vmatmul.mubr.f32.vlgmr.msra.gmra.mrb[10].mxu0 %v849_v25  ;;  %v845_v6 = vld [vmem:[#allocation3 + $0x10] sm:$0xff] }
 0x280   :  { %2048 = vmatpush3.bf16.msra.mxu0 %v2045_v1  ;;  %1799 = vmatprep.mubr.f32.mxu0 %v840_v9 }
 0x281   :  { %2050 = vmatprep.subr.bf16.mxu0 %v2049_v24  ;;  %1992 = vmatpush3.bf16.msra.mxu1 %v1989_v16 }
 0x282   :  { %1994 = vmatprep.subr.bf16.mxu1 %v1993_v26 }
 0x284   :  { %2052 = vmatpush3.bf16.msra.mxu0 %v2049_v24 }
 0x285   :  { %2054 = vmatprep.subr.bf16.mxu0 %v2053_v28  ;;  %1996 = vmatpush3.bf16.msra.mxu1 %v1993_v26 }
 0x286   :  { %1998 = vmatprep.subr.bf16.mxu1 %v1997_v30 }
 0x288   :  { %2056 = vmatpush3.bf16.msra.mxu0 %v2053_v28 }
 0x289   :  { %2058 = vmatprep.subr.bf16.mxu0 %v2057_v34  ;;  %2000 = vmatpush3.bf16.msra.mxu1 %v1997_v30 }
 0x28a   :  { %2002 = vmatprep.subr.bf16.mxu1 %v2001_v37 }
 0x28c   :  { %2060 = vmatpush3.bf16.msra.mxu0 %v2057_v34 }
 0x28d   :  { %2062 = vmatprep.subr.bf16.mxu0 %v2061_v40  ;;  %2004 = vmatpush3.bf16.msra.mxu1 %v2001_v37 }
 0x28e   :  { %2006 = vmatprep.subr.bf16.mxu1 %v2005_v43 }
 0x290   :  { %2064 = vmatpush3.bf16.msra.mxu0 %v2061_v40 }
 0x291   :  { %2066 = vmatprep.subr.bf16.mxu0 %v2065_v48  ;;  %2008 = vmatpush3.bf16.msra.mxu1 %v2005_v43 }
 0x292   :  { %2010 = vmatprep.subr.bf16.mxu1 %v2009_v51 }
 0x294   :  { %2068 = vmatpush3.bf16.msra.mxu0 %v2065_v48 }
 0x295   :  { %2070 = vmatprep.subr.bf16.mxu0 %v2069_v52  ;;  %2012 = vmatpush3.bf16.msra.mxu1 %v2009_v51 }
 0x298   :  { %2072 = vmatpush3.bf16.msra.mxu0 %v2069_v52  ;;  %1730 = vmatmul.mubr.f32.vlgmr.msra.gmra.mrb[10].mxu1 %v845_v6 }
 0x299   :  { %2074 = vmatprep.subr.bf16.mxu0 %v2073_v55 }
 0x29c   :  { %2076 = vmatpush3.bf16.msra.mxu0 %v2073_v55 }
 0x29f   :  { %1800 = vmatmul.mubr.f32.vlgmr.msra.gmra.mrb[10].mxu0 %v2764_v63 }
 0x36b   :  { %v1731_v57 = vpop.f32.mrb[10].mxu1 }
 0x36c   :  { %v1225_v58 = vadd.f32 %v1731_v57, %v1398_v56  ;;  %v1024_v59 = vpop.f32.mrb[11].mxu1 }
 0x36d   :  { %v1224_v60 = vadd.f32 %v1398_v56, %v1024_v59 }
 0x36e   :  { %v1227_v8 = vmax.f32 %v1225_v58, 0.0 }
 0x36f   :  { %v1226_v5 = vmax.f32 %v1224_v60, 0.0 }
 0x372   :  { %v1801_v61 = vpop.f32.mrb[10].mxu0 }
 0x373   :  { %v1208_v62 = vpop.f32.mrb[11].mxu0  ;;  %v1229_v2 = vadd.f32 %v1801_v61, %v1398_v56 }
 0x374   :  { %v1228_v1 = vadd.f32 %v1398_v56, %v1208_v62 }
 0x375   :  { %v1231_v4 = vmax.f32 %v1229_v2, 0.0 }
 0x376   :  { %v1230_v3 = vmax.f32 %v1228_v1, 0.0 }
 0x378   :  { %1234 = vrot.lane.b32.xlu1 %v1230_v3, %s2090_s21 }
 0x37c   :  { %1236 = vrot.lane.b32.xlu1 %v1231_v4, %s2090_s21 }
 0x3ea   :  { %v1235_v17 = vpop.permute.xlu1 %1234 }
 0x3eb   :  { %v1240_v7 = vsel %vm74_vm0, %v1226_v5, %v1235_v17 }
 0x3ec   :  { %1242 = vst [vmem:[%s2871_s11] sm:$0xff] %v1240_v7 }
 0x3ee   :  { %v1237_v9 = vpop.permute.xlu1 %1236 }
 0x3ef   :  { %v1241_v10 = vsel %vm74_vm0, %v1227_v8, %v1237_v9 }
 0x3f0   :  { %1243 = vst [vmem:[%s2871_s11 + $0x8] sm:$0xff] %v1241_v10 }

</bundles_post_ra>
